<compile_context>
chip_gen: v5e
topology: v5e:2x2
jax: 0.10.0
libtpu: 0.0.40
codegen_flags: <defaults>
</compile_context>

<pallas_src>
import functools
import math

import jax
import jax.numpy as jnp
from jax import lax
from jax.experimental import pallas as pl
from jax.experimental.pallas import tpu as pltpu


# ---------------------------------------------------------------------------
# Fused Pallas kernel: QKV projection + GQA attention + output projection
# ---------------------------------------------------------------------------
def _fused_gqa_kernel(x_ref, wqkv_ref, wo_ref, o_ref, qkv_ref, *,
                      bb, seq, num_heads, num_kv_heads, lane_slot):
    """One grid step = `bb` batch elements (batch folded into rows).

    x_ref    : (bb*seq, Din)
    wqkv_ref : (Din, (H + 2*G) * lane_slot)  fused, head-major, lane-padded QKV
               weights; 1/sqrt(d) already folded into the Q portion.
    wo_ref   : (H, lane_slot, Dout)          lane-padded output projection.
    o_ref    : (bb*seq, Dout)
    qkv_ref  : VMEM scratch (bb*seq, (H + 2*G) * lane_slot)
    """
    num_repeat = num_heads // num_kv_heads
    dout = o_ref.shape[-1]

    # Fused QKV projection: one MXU matmul for the whole batch block.
    qkv_ref[...] = jnp.dot(x_ref[...], wqkv_ref[...],
                           preferred_element_type=jnp.float32)

    k_base = num_heads * lane_slot
    v_base = (num_heads + num_kv_heads) * lane_slot

    for b in range(bb):                          # static, each iter self-contained
        r0 = b * seq
        o_acc = jnp.zeros((seq, dout), jnp.float32)
        for g in range(num_kv_heads):
            # 128-lane-aligned slices (zero beyond head_dim) - cheap aligned loads.
            kg = qkv_ref[r0:r0 + seq,
                         k_base + g * lane_slot:k_base + (g + 1) * lane_slot]
            vg = qkv_ref[r0:r0 + seq,
                         v_base + g * lane_slot:v_base + (g + 1) * lane_slot]
            for r in range(num_repeat):
                h = g * num_repeat + r
                qh = qkv_ref[r0:r0 + seq, h * lane_slot:(h + 1) * lane_slot]
                # Scores: contract the (padded) head dim; padding lanes are zero
                # in both operands so the result is exact.  Scale already folded
                # into the query weights.
                s = lax.dot_general(qh, kg, (((1,), (1,)), ((), ())),
                                    preferred_element_type=jnp.float32)  # (S, S)
                m = jnp.max(s, axis=-1, keepdims=True)
                p = jnp.exp(s - m)
                l = jnp.sum(p, axis=-1, keepdims=True)
                p = p * (1.0 / l)          # exact softmax on the tiny (S, S) tile
                pv = jnp.dot(p, vg, preferred_element_type=jnp.float32)  # (S, slot)
                # Per-head output projection accumulated in place - no lane concat.
                o_acc = o_acc + jnp.dot(pv, wo_ref[h],
                                        preferred_element_type=jnp.float32)
        o_ref[r0:r0 + seq, :] = o_acc.astype(o_ref.dtype)


# ---------------------------------------------------------------------------
# Module-equivalent wrapper
# ---------------------------------------------------------------------------
class GroupQueryFlashAttentionPallas:
    def __init__(
        self,
        input_size: int,
        output_size: int,
        hidden_size: int = 128,
        num_heads: int = 8,
        num_kv_heads: int = 4,
        key: jax.Array | None = None,
    ):
        assert hidden_size % num_heads == 0
        assert num_heads % num_kv_heads == 0
        self.num_heads = num_heads
        self.num_kv_heads = num_kv_heads
        self.num_repeat = num_heads // num_kv_heads
        self.head_dim = hidden_size // num_heads
        self.hidden_size = hidden_size
        self.input_size = input_size
        self.output_size = output_size
        kv_hidden = self.head_dim * num_kv_heads

        # Deterministic synthetic weights (torch.nn.Linear layout: (out, in)),
        # kept as-is for the pure-JAX reference.
        if key is None:
            key = jax.random.PRNGKey(0)
        kq, kk, kv, ko = jax.random.split(key, 4)
        self.wq = jax.random.normal(kq, (hidden_size, input_size), jnp.float32) * 0.05
        self.wk = jax.random.normal(kk, (kv_hidden, input_size), jnp.float32) * 0.05
        self.wv = jax.random.normal(kv, (kv_hidden, input_size), jnp.float32) * 0.05
        self.wo = jax.random.normal(ko, (output_size, hidden_size), jnp.float32) * 0.05

        # --- kernel-side weight layout, built ONCE --------------------------
        d = self.head_dim
        # Each head's d columns occupy their own 128-lane tile so the kernel
        # never slices below 128-lane granularity.
        self.lane_slot = ((d + 127) // 128) * 128
        slot = self.lane_slot
        scale = 1.0 / math.sqrt(d)      # matches SDPA default scaling

        def pad_heads(w_t, n_heads):
            # (Din, n_heads*d) -> (Din, n_heads*slot), zero lanes beyond d.
            din = w_t.shape[0]
            w3 = w_t.reshape(din, n_heads, d)
            w3 = jnp.pad(w3, ((0, 0), (0, 0), (0, slot - d)))
            return w3.reshape(din, n_heads * slot)

        # Fused, head-major QKV slab; softmax scale folded into the Q portion.
        self.wqkv_pad = jnp.concatenate(
            [pad_heads(self.wq.T * scale, num_heads),
             pad_heads(self.wk.T, num_kv_heads),
             pad_heads(self.wv.T, num_kv_heads)],
            axis=1)                                   # (Din, (H + 2G) * slot)
        # Output projection as (H, slot, Dout); rows beyond d are zero.
        wo3 = self.wo.T.reshape(num_heads, d, output_size)
        self.wo_pad = jnp.pad(wo3, ((0, 0), (0, slot - d), (0, 0)))

        # v7x has 2 TensorCores per chip -> split the batch across 2 parallel
        # grid steps there; v5e/v6e run a single fat step.  Detection is a
        # perf-only hint (correctness-neutral if it misfires).
        try:
            kind = jax.devices()[0].device_kind.lower()
        except Exception:
            kind = ""
        self._two_tensorcores = ("v7" in kind) or ("7x" in kind)

    def __call__(self, x: jax.Array, condition=None, relative_positions=None) -> jax.Array:
        # TODO(synk): ConditionedNorm (use_conditional_norm=True) and
        # RotaryEmbedding (relative_positions) branches are not implemented;
        # atten_dropout=0.0 so dropout is a no-op; unmasked SDPA as in the spec.
        assert condition is None and relative_positions is None
        *lead, S, Din = x.shape
        assert Din == self.input_size
        B = int(math.prod(lead)) if lead else 1
        xf = x.reshape(B * S, Din)

        nb = 2 if (self._two_tensorcores and B >= 2 and B % 2 == 0) else 1
        bb = B // nb
        H, G, slot = self.num_heads, self.num_kv_heads, self.lane_slot
        nslot = H + 2 * G
        dout = self.output_size

        kernel = functools.partial(
            _fused_gqa_kernel,
            bb=bb, seq=S, num_heads=H, num_kv_heads=G, lane_slot=slot)

        out = pl.pallas_call(
            kernel,
            out_shape=jax.ShapeDtypeStruct((B * S, dout), x.dtype),
            grid=(nb,),
            in_specs=[
                pl.BlockSpec((bb * S, Din), lambda i: (i, 0)),
                # Weight blocks are constant across the grid -> fetched once.
                pl.BlockSpec((Din, nslot * slot), lambda i: (0, 0)),
                pl.BlockSpec((H, slot, dout), lambda i: (0, 0, 0)),
            ],
            out_specs=pl.BlockSpec((bb * S, dout), lambda i: (i, 0)),
            scratch_shapes=[pltpu.VMEM((bb * S, nslot * slot), jnp.float32)],
            compiler_params=pltpu.CompilerParams(
                dimension_semantics=("parallel",)),
        )(xf, self.wqkv_pad, self.wo_pad)
        return out.reshape(*lead, S, dout)


# ---------------------------------------------------------------------------
# Pure-JAX reference (mirrors the PyTorch forward) for validation.
# ---------------------------------------------------------------------------
def _reference(mod: GroupQueryFlashAttentionPallas, x: jax.Array) -> jax.Array:
    B, S, _ = x.shape
    q = x @ mod.wq.T
    k = x @ mod.wk.T
    v = x @ mod.wv.T
    q = q.reshape(B, S, mod.num_heads, mod.head_dim).transpose(0, 2, 1, 3)
    k = k.reshape(B, S, mod.num_kv_heads, mod.head_dim).transpose(0, 2, 1, 3)
    v = v.reshape(B, S, mod.num_kv_heads, mod.head_dim).transpose(0, 2, 1, 3)
    k = jnp.repeat(k, mod.num_repeat, axis=1)
    v = jnp.repeat(v, mod.num_repeat, axis=1)
    s = jnp.einsum("bhqd,bhkd->bhqk", q, k) / math.sqrt(mod.head_dim)
    p = jax.nn.softmax(s, axis=-1)
    o = jnp.einsum("bhqk,bhkd->bhqd", p, v)
    o = o.transpose(0, 2, 1, 3).reshape(B, S, -1)
    return o @ mod.wo.T


if __name__ == "__main__":
    key = jax.random.PRNGKey(0)
    kx, kw = jax.random.split(key)

    # Small shapes consistent with the module's forward: (B, S, input_size).
    B, S, input_size, output_size = 2, 8, 32, 32
    hidden_size, num_heads, num_kv_heads = 128, 8, 4

    x = jax.random.normal(kx, (B, S, input_size), jnp.float32)

    mod = GroupQueryFlashAttentionPallas(
        input_size, output_size,
        hidden_size=hidden_size, num_heads=num_heads, num_kv_heads=num_kv_heads,
        key=kw,
    )

    out = mod(x)
    jax.block_until_ready(out)

    ref = _reference(mod, x)
    assert out.shape == (B, S, output_size), out.shape
    err = float(jnp.max(jnp.abs(out - ref)))
    assert jnp.allclose(out, ref, atol=2e-3, rtol=2e-3), err

    print("KERNEL_OK")
</pallas_src>

<mosaic_0001>
module attributes {stable_mosaic.version = 11 : i64} {
  func.func @_fused_gqa_kernel(%arg0: i32, %arg1: memref<16x32xf32, #tpu.memory_space<vmem>>, %arg2: memref<32x2048xf32, #tpu.memory_space<vmem>>, %arg3: memref<8x128x32xf32, #tpu.memory_space<vmem>>, %arg4: memref<16x32xf32, #tpu.memory_space<vmem>>, %arg5: memref<16x2048xf32, #tpu.memory_space<vmem>>) attributes {dimension_semantics = [#tpu.dimension_semantics<parallel>], iteration_bounds = array<i64: 1>, scalar_prefetch = 0 : i64, scratch_operands = 1 : i64, tpu.core_type = #tpu.core_type<tc>, window_params = [{transform_indices = @transform_0, window_bounds = array<i64: 16, 32>}, {pipeline_mode = #tpu.pipeline_mode<synchronous>, transform_indices = @transform_1, window_bounds = array<i64: 32, 2048>}, {pipeline_mode = #tpu.pipeline_mode<synchronous>, transform_indices = @transform_2, window_bounds = array<i64: 8, 128, 32>}, {transform_indices = @transform_3, window_bounds = array<i64: 16, 32>}]} {
    %c0 = arith.constant 0 : index
    %c0_0 = arith.constant 0 : index
    %0 = vector.load %arg1[%c0, %c0_0] : memref<16x32xf32, #tpu.memory_space<vmem>>, vector<16x32xf32>
    %c0_1 = arith.constant 0 : index
    %c0_2 = arith.constant 0 : index
    %1 = vector.load %arg2[%c0_1, %c0_2] : memref<32x2048xf32, #tpu.memory_space<vmem>>, vector<32x2048xf32>
    %cst = arith.constant dense<0.000000e+00> : vector<16x2048xf32>
    %2 = tpu.matmul %0, %1, %cst {dimension_numbers = #tpu.dot_dimension_numbers<[1], [0], [0], [1], [0, 0, 1, 1], [], []>} : vector<16x32xf32>, vector<32x2048xf32>, vector<16x2048xf32> -> vector<16x2048xf32>
    %c0_3 = arith.constant 0 : index
    %c0_4 = arith.constant 0 : index
    %3 = vector.load %arg5[%c0_3, %c0_4] : memref<16x2048xf32, #tpu.memory_space<vmem>>, vector<16x2048xf32>
    tpu.vector_store %arg5[%c0_3, %c0_4], %2 {strides = array<i32>} : memref<16x2048xf32, #tpu.memory_space<vmem>>, vector<16x2048xf32>,
    %cst_5 = arith.constant 0.000000e+00 : f32
    %4 = vector.broadcast %cst_5 : f32 to vector<8x32xf32>
    %c0_6 = arith.constant 0 : index
    %c1024 = arith.constant 1024 : index
    %5 = vector.load %arg5[%c0_6, %c1024] : memref<16x2048xf32, #tpu.memory_space<vmem>>, vector<8x128xf32>
    %c0_7 = arith.constant 0 : index
    %c1536 = arith.constant 1536 : index
    %6 = vector.load %arg5[%c0_7, %c1536] : memref<16x2048xf32, #tpu.memory_space<vmem>>, vector<8x128xf32>
    %c0_8 = arith.constant 0 : index
    %c0_9 = arith.constant 0 : index
    %7 = vector.load %arg5[%c0_8, %c0_9] : memref<16x2048xf32, #tpu.memory_space<vmem>>, vector<8x128xf32>
    %cst_10 = arith.constant dense<0.000000e+00> : vector<8x8xf32>
    %8 = tpu.matmul %7, %5, %cst_10 {dimension_numbers = #tpu.dot_dimension_numbers<[1], [1], [0], [0], [0, 0, 1, 0], [], []>} : vector<8x128xf32>, vector<8x128xf32>, vector<8x8xf32> -> vector<8x8xf32>
    %cst_11 = arith.constant dense<0xFF800000> : vector<8xf32>
    %9 = vector.multi_reduction <maximumf>, %8, %cst_11 [1] : vector<8x8xf32> to vector<8xf32>
    %10 = vector.shape_cast %9 : vector<8xf32> to vector<8x1xf32>
    %11 = vector.broadcast %10 : vector<8x1xf32> to vector<8x8xf32>
    %12 = arith.subf %8, %11 : vector<8x8xf32>
    %13 = math.exp %12 : vector<8x8xf32>
    %cst_12 = arith.constant dense<0.000000e+00> : vector<8xf32>
    %14 = vector.multi_reduction <add>, %13, %cst_12 [1] : vector<8x8xf32> to vector<8xf32>
    %15 = vector.shape_cast %14 : vector<8xf32> to vector<8x1xf32>
    %cst_13 = arith.constant 1.000000e+00 : f32
    %16 = vector.broadcast %cst_13 : f32 to vector<8x1xf32>
    %17 = arith.divf %16, %15 : vector<8x1xf32>
    %18 = vector.broadcast %17 : vector<8x1xf32> to vector<8x8xf32>
    %19 = arith.mulf %13, %18 : vector<8x8xf32>
    %cst_14 = arith.constant dense<0.000000e+00> : vector<8x128xf32>
    %20 = tpu.matmul %19, %6, %cst_14 {dimension_numbers = #tpu.dot_dimension_numbers<[1], [0], [0], [1], [0, 0, 1, 1], [], []>} : vector<8x8xf32>, vector<8x128xf32>, vector<8x128xf32> -> vector<8x128xf32>
    %c0_15 = arith.constant 0 : index
    %c0_16 = arith.constant 0 : index
    %c0_17 = arith.constant 0 : index
    %21 = vector.load %arg3[%c0_15, %c0_16, %c0_17] : memref<8x128x32xf32, #tpu.memory_space<vmem>>, vector<1x128x32xf32>
    %22 = vector.shape_cast %21 : vector<1x128x32xf32> to vector<128x32xf32>
    %cst_18 = arith.constant dense<0.000000e+00> : vector<8x32xf32>
    %23 = tpu.matmul %20, %22, %cst_18 {dimension_numbers = #tpu.dot_dimension_numbers<[1], [0], [0], [1], [0, 0, 1, 1], [], []>} : vector<8x128xf32>, vector<128x32xf32>, vector<8x32xf32> -> vector<8x32xf32>
    %24 = arith.addf %4, %23 : vector<8x32xf32>
    %c0_19 = arith.constant 0 : index
    %c128 = arith.constant 128 : index
    %25 = vector.load %arg5[%c0_19, %c128] : memref<16x2048xf32, #tpu.memory_space<vmem>>, vector<8x128xf32>
    %cst_20 = arith.constant dense<0.000000e+00> : vector<8x8xf32>
    %26 = tpu.matmul %25, %5, %cst_20 {dimension_numbers = #tpu.dot_dimension_numbers<[1], [1], [0], [0], [0, 0, 1, 0], [], []>} : vector<8x128xf32>, vector<8x128xf32>, vector<8x8xf32> -> vector<8x8xf32>
    %cst_21 = arith.constant dense<0xFF800000> : vector<8xf32>
    %27 = vector.multi_reduction <maximumf>, %26, %cst_21 [1] : vector<8x8xf32> to vector<8xf32>
    %28 = vector.shape_cast %27 : vector<8xf32> to vector<8x1xf32>
    %29 = vector.broadcast %28 : vector<8x1xf32> to vector<8x8xf32>
    %30 = arith.subf %26, %29 : vector<8x8xf32>
    %31 = math.exp %30 : vector<8x8xf32>
    %cst_22 = arith.constant dense<0.000000e+00> : vector<8xf32>
    %32 = vector.multi_reduction <add>, %31, %cst_22 [1] : vector<8x8xf32> to vector<8xf32>
    %33 = vector.shape_cast %32 : vector<8xf32> to vector<8x1xf32>
    %cst_23 = arith.constant 1.000000e+00 : f32
    %34 = vector.broadcast %cst_23 : f32 to vector<8x1xf32>
    %35 = arith.divf %34, %33 : vector<8x1xf32>
    %36 = vector.broadcast %35 : vector<8x1xf32> to vector<8x8xf32>
    %37 = arith.mulf %31, %36 : vector<8x8xf32>
    %cst_24 = arith.constant dense<0.000000e+00> : vector<8x128xf32>
    %38 = tpu.matmul %37, %6, %cst_24 {dimension_numbers = #tpu.dot_dimension_numbers<[1], [0], [0], [1], [0, 0, 1, 1], [], []>} : vector<8x8xf32>, vector<8x128xf32>, vector<8x128xf32> -> vector<8x128xf32>
    %c1 = arith.constant 1 : index
    %c0_25 = arith.constant 0 : index
    %c0_26 = arith.constant 0 : index
    %39 = vector.load %arg3[%c1, %c0_25, %c0_26] : memref<8x128x32xf32, #tpu.memory_space<vmem>>, vector<1x128x32xf32>
    %40 = vector.shape_cast %39 : vector<1x128x32xf32> to vector<128x32xf32>
    %cst_27 = arith.constant dense<0.000000e+00> : vector<8x32xf32>
    %41 = tpu.matmul %38, %40, %cst_27 {dimension_numbers = #tpu.dot_dimension_numbers<[1], [0], [0], [1], [0, 0, 1, 1], [], []>} : vector<8x128xf32>, vector<128x32xf32>, vector<8x32xf32> -> vector<8x32xf32>
    %42 = arith.addf %24, %41 : vector<8x32xf32>
    %c0_28 = arith.constant 0 : index
    %c1152 = arith.constant 1152 : index
    %43 = vector.load %arg5[%c0_28, %c1152] : memref<16x2048xf32, #tpu.memory_space<vmem>>, vector<8x128xf32>
    %c0_29 = arith.constant 0 : index
    %c1664 = arith.constant 1664 : index
    %44 = vector.load %arg5[%c0_29, %c1664] : memref<16x2048xf32, #tpu.memory_space<vmem>>, vector<8x128xf32>
    %c0_30 = arith.constant 0 : index
    %c256 = arith.constant 256 : index
    %45 = vector.load %arg5[%c0_30, %c256] : memref<16x2048xf32, #tpu.memory_space<vmem>>, vector<8x128xf32>
    %cst_31 = arith.constant dense<0.000000e+00> : vector<8x8xf32>
    %46 = tpu.matmul %45, %43, %cst_31 {dimension_numbers = #tpu.dot_dimension_numbers<[1], [1], [0], [0], [0, 0, 1, 0], [], []>} : vector<8x128xf32>, vector<8x128xf32>, vector<8x8xf32> -> vector<8x8xf32>
    %cst_32 = arith.constant dense<0xFF800000> : vector<8xf32>
    %47 = vector.multi_reduction <maximumf>, %46, %cst_32 [1] : vector<8x8xf32> to vector<8xf32>
    %48 = vector.shape_cast %47 : vector<8xf32> to vector<8x1xf32>
    %49 = vector.broadcast %48 : vector<8x1xf32> to vector<8x8xf32>
    %50 = arith.subf %46, %49 : vector<8x8xf32>
    %51 = math.exp %50 : vector<8x8xf32>
    %cst_33 = arith.constant dense<0.000000e+00> : vector<8xf32>
    %52 = vector.multi_reduction <add>, %51, %cst_33 [1] : vector<8x8xf32> to vector<8xf32>
    %53 = vector.shape_cast %52 : vector<8xf32> to vector<8x1xf32>
    %cst_34 = arith.constant 1.000000e+00 : f32
    %54 = vector.broadcast %cst_34 : f32 to vector<8x1xf32>
    %55 = arith.divf %54, %53 : vector<8x1xf32>
    %56 = vector.broadcast %55 : vector<8x1xf32> to vector<8x8xf32>
    %57 = arith.mulf %51, %56 : vector<8x8xf32>
    %cst_35 = arith.constant dense<0.000000e+00> : vector<8x128xf32>
    %58 = tpu.matmul %57, %44, %cst_35 {dimension_numbers = #tpu.dot_dimension_numbers<[1], [0], [0], [1], [0, 0, 1, 1], [], []>} : vector<8x8xf32>, vector<8x128xf32>, vector<8x128xf32> -> vector<8x128xf32>
    %c2 = arith.constant 2 : index
    %c0_36 = arith.constant 0 : index
    %c0_37 = arith.constant 0 : index
    %59 = vector.load %arg3[%c2, %c0_36, %c0_37] : memref<8x128x32xf32, #tpu.memory_space<vmem>>, vector<1x128x32xf32>
    %60 = vector.shape_cast %59 : vector<1x128x32xf32> to vector<128x32xf32>
    %cst_38 = arith.constant dense<0.000000e+00> : vector<8x32xf32>
    %61 = tpu.matmul %58, %60, %cst_38 {dimension_numbers = #tpu.dot_dimension_numbers<[1], [0], [0], [1], [0, 0, 1, 1], [], []>} : vector<8x128xf32>, vector<128x32xf32>, vector<8x32xf32> -> vector<8x32xf32>
    %62 = arith.addf %42, %61 : vector<8x32xf32>
    %c0_39 = arith.constant 0 : index
    %c384 = arith.constant 384 : index
    %63 = vector.load %arg5[%c0_39, %c384] : memref<16x2048xf32, #tpu.memory_space<vmem>>, vector<8x128xf32>
    %cst_40 = arith.constant dense<0.000000e+00> : vector<8x8xf32>
    %64 = tpu.matmul %63, %43, %cst_40 {dimension_numbers = #tpu.dot_dimension_numbers<[1], [1], [0], [0], [0, 0, 1, 0], [], []>} : vector<8x128xf32>, vector<8x128xf32>, vector<8x8xf32> -> vector<8x8xf32>
    %cst_41 = arith.constant dense<0xFF800000> : vector<8xf32>
    %65 = vector.multi_reduction <maximumf>, %64, %cst_41 [1] : vector<8x8xf32> to vector<8xf32>
    %66 = vector.shape_cast %65 : vector<8xf32> to vector<8x1xf32>
    %67 = vector.broadcast %66 : vector<8x1xf32> to vector<8x8xf32>
    %68 = arith.subf %64, %67 : vector<8x8xf32>
    %69 = math.exp %68 : vector<8x8xf32>
    %cst_42 = arith.constant dense<0.000000e+00> : vector<8xf32>
    %70 = vector.multi_reduction <add>, %69, %cst_42 [1] : vector<8x8xf32> to vector<8xf32>
    %71 = vector.shape_cast %70 : vector<8xf32> to vector<8x1xf32>
    %cst_43 = arith.constant 1.000000e+00 : f32
    %72 = vector.broadcast %cst_43 : f32 to vector<8x1xf32>
    %73 = arith.divf %72, %71 : vector<8x1xf32>
    %74 = vector.broadcast %73 : vector<8x1xf32> to vector<8x8xf32>
    %75 = arith.mulf %69, %74 : vector<8x8xf32>
    %cst_44 = arith.constant dense<0.000000e+00> : vector<8x128xf32>
    %76 = tpu.matmul %75, %44, %cst_44 {dimension_numbers = #tpu.dot_dimension_numbers<[1], [0], [0], [1], [0, 0, 1, 1], [], []>} : vector<8x8xf32>, vector<8x128xf32>, vector<8x128xf32> -> vector<8x128xf32>
    %c3 = arith.constant 3 : index
    %c0_45 = arith.constant 0 : index
    %c0_46 = arith.constant 0 : index
    %77 = vector.load %arg3[%c3, %c0_45, %c0_46] : memref<8x128x32xf32, #tpu.memory_space<vmem>>, vector<1x128x32xf32>
    %78 = vector.shape_cast %77 : vector<1x128x32xf32> to vector<128x32xf32>
    %cst_47 = arith.constant dense<0.000000e+00> : vector<8x32xf32>
    %79 = tpu.matmul %76, %78, %cst_47 {dimension_numbers = #tpu.dot_dimension_numbers<[1], [0], [0], [1], [0, 0, 1, 1], [], []>} : vector<8x128xf32>, vector<128x32xf32>, vector<8x32xf32> -> vector<8x32xf32>
    %80 = arith.addf %62, %79 : vector<8x32xf32>
    %c0_48 = arith.constant 0 : index
    %c1280 = arith.constant 1280 : index
    %81 = vector.load %arg5[%c0_48, %c1280] : memref<16x2048xf32, #tpu.memory_space<vmem>>, vector<8x128xf32>
    %c0_49 = arith.constant 0 : index
    %c1792 = arith.constant 1792 : index
    %82 = vector.load %arg5[%c0_49, %c1792] : memref<16x2048xf32, #tpu.memory_space<vmem>>, vector<8x128xf32>
    %c0_50 = arith.constant 0 : index
    %c512 = arith.constant 512 : index
    %83 = vector.load %arg5[%c0_50, %c512] : memref<16x2048xf32, #tpu.memory_space<vmem>>, vector<8x128xf32>
    %cst_51 = arith.constant dense<0.000000e+00> : vector<8x8xf32>
    %84 = tpu.matmul %83, %81, %cst_51 {dimension_numbers = #tpu.dot_dimension_numbers<[1], [1], [0], [0], [0, 0, 1, 0], [], []>} : vector<8x128xf32>, vector<8x128xf32>, vector<8x8xf32> -> vector<8x8xf32>
    %cst_52 = arith.constant dense<0xFF800000> : vector<8xf32>
    %85 = vector.multi_reduction <maximumf>, %84, %cst_52 [1] : vector<8x8xf32> to vector<8xf32>
    %86 = vector.shape_cast %85 : vector<8xf32> to vector<8x1xf32>
    %87 = vector.broadcast %86 : vector<8x1xf32> to vector<8x8xf32>
    %88 = arith.subf %84, %87 : vector<8x8xf32>
    %89 = math.exp %88 : vector<8x8xf32>
    %cst_53 = arith.constant dense<0.000000e+00> : vector<8xf32>
    %90 = vector.multi_reduction <add>, %89, %cst_53 [1] : vector<8x8xf32> to vector<8xf32>
    %91 = vector.shape_cast %90 : vector<8xf32> to vector<8x1xf32>
    %cst_54 = arith.constant 1.000000e+00 : f32
    %92 = vector.broadcast %cst_54 : f32 to vector<8x1xf32>
    %93 = arith.divf %92, %91 : vector<8x1xf32>
    %94 = vector.broadcast %93 : vector<8x1xf32> to vector<8x8xf32>
    %95 = arith.mulf %89, %94 : vector<8x8xf32>
    %cst_55 = arith.constant dense<0.000000e+00> : vector<8x128xf32>
    %96 = tpu.matmul %95, %82, %cst_55 {dimension_numbers = #tpu.dot_dimension_numbers<[1], [0], [0], [1], [0, 0, 1, 1], [], []>} : vector<8x8xf32>, vector<8x128xf32>, vector<8x128xf32> -> vector<8x128xf32>
    %c4 = arith.constant 4 : index
    %c0_56 = arith.constant 0 : index
    %c0_57 = arith.constant 0 : index
    %97 = vector.load %arg3[%c4, %c0_56, %c0_57] : memref<8x128x32xf32, #tpu.memory_space<vmem>>, vector<1x128x32xf32>
    %98 = vector.shape_cast %97 : vector<1x128x32xf32> to vector<128x32xf32>
    %cst_58 = arith.constant dense<0.000000e+00> : vector<8x32xf32>
    %99 = tpu.matmul %96, %98, %cst_58 {dimension_numbers = #tpu.dot_dimension_numbers<[1], [0], [0], [1], [0, 0, 1, 1], [], []>} : vector<8x128xf32>, vector<128x32xf32>, vector<8x32xf32> -> vector<8x32xf32>
    %100 = arith.addf %80, %99 : vector<8x32xf32>
    %c0_59 = arith.constant 0 : index
    %c640 = arith.constant 640 : index
    %101 = vector.load %arg5[%c0_59, %c640] : memref<16x2048xf32, #tpu.memory_space<vmem>>, vector<8x128xf32>
    %cst_60 = arith.constant dense<0.000000e+00> : vector<8x8xf32>
    %102 = tpu.matmul %101, %81, %cst_60 {dimension_numbers = #tpu.dot_dimension_numbers<[1], [1], [0], [0], [0, 0, 1, 0], [], []>} : vector<8x128xf32>, vector<8x128xf32>, vector<8x8xf32> -> vector<8x8xf32>
    %cst_61 = arith.constant dense<0xFF800000> : vector<8xf32>
    %103 = vector.multi_reduction <maximumf>, %102, %cst_61 [1] : vector<8x8xf32> to vector<8xf32>
    %104 = vector.shape_cast %103 : vector<8xf32> to vector<8x1xf32>
    %105 = vector.broadcast %104 : vector<8x1xf32> to vector<8x8xf32>
    %106 = arith.subf %102, %105 : vector<8x8xf32>
    %107 = math.exp %106 : vector<8x8xf32>
    %cst_62 = arith.constant dense<0.000000e+00> : vector<8xf32>
    %108 = vector.multi_reduction <add>, %107, %cst_62 [1] : vector<8x8xf32> to vector<8xf32>
    %109 = vector.shape_cast %108 : vector<8xf32> to vector<8x1xf32>
    %cst_63 = arith.constant 1.000000e+00 : f32
    %110 = vector.broadcast %cst_63 : f32 to vector<8x1xf32>
    %111 = arith.divf %110, %109 : vector<8x1xf32>
    %112 = vector.broadcast %111 : vector<8x1xf32> to vector<8x8xf32>
    %113 = arith.mulf %107, %112 : vector<8x8xf32>
    %cst_64 = arith.constant dense<0.000000e+00> : vector<8x128xf32>
    %114 = tpu.matmul %113, %82, %cst_64 {dimension_numbers = #tpu.dot_dimension_numbers<[1], [0], [0], [1], [0, 0, 1, 1], [], []>} : vector<8x8xf32>, vector<8x128xf32>, vector<8x128xf32> -> vector<8x128xf32>
    %c5 = arith.constant 5 : index
    %c0_65 = arith.constant 0 : index
    %c0_66 = arith.constant 0 : index
    %115 = vector.load %arg3[%c5, %c0_65, %c0_66] : memref<8x128x32xf32, #tpu.memory_space<vmem>>, vector<1x128x32xf32>
    %116 = vector.shape_cast %115 : vector<1x128x32xf32> to vector<128x32xf32>
    %cst_67 = arith.constant dense<0.000000e+00> : vector<8x32xf32>
    %117 = tpu.matmul %114, %116, %cst_67 {dimension_numbers = #tpu.dot_dimension_numbers<[1], [0], [0], [1], [0, 0, 1, 1], [], []>} : vector<8x128xf32>, vector<128x32xf32>, vector<8x32xf32> -> vector<8x32xf32>
    %118 = arith.addf %100, %117 : vector<8x32xf32>
    %c0_68 = arith.constant 0 : index
    %c1408 = arith.constant 1408 : index
    %119 = vector.load %arg5[%c0_68, %c1408] : memref<16x2048xf32, #tpu.memory_space<vmem>>, vector<8x128xf32>
    %c0_69 = arith.constant 0 : index
    %c1920 = arith.constant 1920 : index
    %120 = vector.load %arg5[%c0_69, %c1920] : memref<16x2048xf32, #tpu.memory_space<vmem>>, vector<8x128xf32>
    %c0_70 = arith.constant 0 : index
    %c768 = arith.constant 768 : index
    %121 = vector.load %arg5[%c0_70, %c768] : memref<16x2048xf32, #tpu.memory_space<vmem>>, vector<8x128xf32>
    %cst_71 = arith.constant dense<0.000000e+00> : vector<8x8xf32>
    %122 = tpu.matmul %121, %119, %cst_71 {dimension_numbers = #tpu.dot_dimension_numbers<[1], [1], [0], [0], [0, 0, 1, 0], [], []>} : vector<8x128xf32>, vector<8x128xf32>, vector<8x8xf32> -> vector<8x8xf32>
    %cst_72 = arith.constant dense<0xFF800000> : vector<8xf32>
    %123 = vector.multi_reduction <maximumf>, %122, %cst_72 [1] : vector<8x8xf32> to vector<8xf32>
    %124 = vector.shape_cast %123 : vector<8xf32> to vector<8x1xf32>
    %125 = vector.broadcast %124 : vector<8x1xf32> to vector<8x8xf32>
    %126 = arith.subf %122, %125 : vector<8x8xf32>
    %127 = math.exp %126 : vector<8x8xf32>
    %cst_73 = arith.constant dense<0.000000e+00> : vector<8xf32>
    %128 = vector.multi_reduction <add>, %127, %cst_73 [1] : vector<8x8xf32> to vector<8xf32>
    %129 = vector.shape_cast %128 : vector<8xf32> to vector<8x1xf32>
    %cst_74 = arith.constant 1.000000e+00 : f32
    %130 = vector.broadcast %cst_74 : f32 to vector<8x1xf32>
    %131 = arith.divf %130, %129 : vector<8x1xf32>
    %132 = vector.broadcast %131 : vector<8x1xf32> to vector<8x8xf32>
    %133 = arith.mulf %127, %132 : vector<8x8xf32>
    %cst_75 = arith.constant dense<0.000000e+00> : vector<8x128xf32>
    %134 = tpu.matmul %133, %120, %cst_75 {dimension_numbers = #tpu.dot_dimension_numbers<[1], [0], [0], [1], [0, 0, 1, 1], [], []>} : vector<8x8xf32>, vector<8x128xf32>, vector<8x128xf32> -> vector<8x128xf32>
    %c6 = arith.constant 6 : index
    %c0_76 = arith.constant 0 : index
    %c0_77 = arith.constant 0 : index
    %135 = vector.load %arg3[%c6, %c0_76, %c0_77] : memref<8x128x32xf32, #tpu.memory_space<vmem>>, vector<1x128x32xf32>
    %136 = vector.shape_cast %135 : vector<1x128x32xf32> to vector<128x32xf32>
    %cst_78 = arith.constant dense<0.000000e+00> : vector<8x32xf32>
    %137 = tpu.matmul %134, %136, %cst_78 {dimension_numbers = #tpu.dot_dimension_numbers<[1], [0], [0], [1], [0, 0, 1, 1], [], []>} : vector<8x128xf32>, vector<128x32xf32>, vector<8x32xf32> -> vector<8x32xf32>
    %138 = arith.addf %118, %137 : vector<8x32xf32>
    %c0_79 = arith.constant 0 : index
    %c896 = arith.constant 896 : index
    %139 = vector.load %arg5[%c0_79, %c896] : memref<16x2048xf32, #tpu.memory_space<vmem>>, vector<8x128xf32>
    %cst_80 = arith.constant dense<0.000000e+00> : vector<8x8xf32>
    %140 = tpu.matmul %139, %119, %cst_80 {dimension_numbers = #tpu.dot_dimension_numbers<[1], [1], [0], [0], [0, 0, 1, 0], [], []>} : vector<8x128xf32>, vector<8x128xf32>, vector<8x8xf32> -> vector<8x8xf32>
    %cst_81 = arith.constant dense<0xFF800000> : vector<8xf32>
    %141 = vector.multi_reduction <maximumf>, %140, %cst_81 [1] : vector<8x8xf32> to vector<8xf32>
    %142 = vector.shape_cast %141 : vector<8xf32> to vector<8x1xf32>
    %143 = vector.broadcast %142 : vector<8x1xf32> to vector<8x8xf32>
    %144 = arith.subf %140, %143 : vector<8x8xf32>
    %145 = math.exp %144 : vector<8x8xf32>
    %cst_82 = arith.constant dense<0.000000e+00> : vector<8xf32>
    %146 = vector.multi_reduction <add>, %145, %cst_82 [1] : vector<8x8xf32> to vector<8xf32>
    %147 = vector.shape_cast %146 : vector<8xf32> to vector<8x1xf32>
    %cst_83 = arith.constant 1.000000e+00 : f32
    %148 = vector.broadcast %cst_83 : f32 to vector<8x1xf32>
    %149 = arith.divf %148, %147 : vector<8x1xf32>
    %150 = vector.broadcast %149 : vector<8x1xf32> to vector<8x8xf32>
    %151 = arith.mulf %145, %150 : vector<8x8xf32>
    %cst_84 = arith.constant dense<0.000000e+00> : vector<8x128xf32>
    %152 = tpu.matmul %151, %120, %cst_84 {dimension_numbers = #tpu.dot_dimension_numbers<[1], [0], [0], [1], [0, 0, 1, 1], [], []>} : vector<8x8xf32>, vector<8x128xf32>, vector<8x128xf32> -> vector<8x128xf32>
    %c7 = arith.constant 7 : index
    %c0_85 = arith.constant 0 : index
    %c0_86 = arith.constant 0 : index
    %153 = vector.load %arg3[%c7, %c0_85, %c0_86] : memref<8x128x32xf32, #tpu.memory_space<vmem>>, vector<1x128x32xf32>
    %154 = vector.shape_cast %153 : vector<1x128x32xf32> to vector<128x32xf32>
    %cst_87 = arith.constant dense<0.000000e+00> : vector<8x32xf32>
    %155 = tpu.matmul %152, %154, %cst_87 {dimension_numbers = #tpu.dot_dimension_numbers<[1], [0], [0], [1], [0, 0, 1, 1], [], []>} : vector<8x128xf32>, vector<128x32xf32>, vector<8x32xf32> -> vector<8x32xf32>
    %156 = arith.addf %138, %155 : vector<8x32xf32>
    %c0_88 = arith.constant 0 : index
    %c0_89 = arith.constant 0 : index
    %157 = vector.load %arg4[%c0_88, %c0_89] : memref<16x32xf32, #tpu.memory_space<vmem>>, vector<8x32xf32>
    tpu.vector_store %arg4[%c0_88, %c0_89], %156 {strides = array<i32>} : memref<16x32xf32, #tpu.memory_space<vmem>>, vector<8x32xf32>,
    %cst_90 = arith.constant 0.000000e+00 : f32
    %158 = vector.broadcast %cst_90 : f32 to vector<8x32xf32>
    %c8 = arith.constant 8 : index
    %c1024_91 = arith.constant 1024 : index
    %159 = vector.load %arg5[%c8, %c1024_91] : memref<16x2048xf32, #tpu.memory_space<vmem>>, vector<8x128xf32>
    %c8_92 = arith.constant 8 : index
    %c1536_93 = arith.constant 1536 : index
    %160 = vector.load %arg5[%c8_92, %c1536_93] : memref<16x2048xf32, #tpu.memory_space<vmem>>, vector<8x128xf32>
    %c8_94 = arith.constant 8 : index
    %c0_95 = arith.constant 0 : index
    %161 = vector.load %arg5[%c8_94, %c0_95] : memref<16x2048xf32, #tpu.memory_space<vmem>>, vector<8x128xf32>
    %cst_96 = arith.constant dense<0.000000e+00> : vector<8x8xf32>
    %162 = tpu.matmul %161, %159, %cst_96 {dimension_numbers = #tpu.dot_dimension_numbers<[1], [1], [0], [0], [0, 0, 1, 0], [], []>} : vector<8x128xf32>, vector<8x128xf32>, vector<8x8xf32> -> vector<8x8xf32>
    %cst_97 = arith.constant dense<0xFF800000> : vector<8xf32>
    %163 = vector.multi_reduction <maximumf>, %162, %cst_97 [1] : vector<8x8xf32> to vector<8xf32>
    %164 = vector.shape_cast %163 : vector<8xf32> to vector<8x1xf32>
    %165 = vector.broadcast %164 : vector<8x1xf32> to vector<8x8xf32>
    %166 = arith.subf %162, %165 : vector<8x8xf32>
    %167 = math.exp %166 : vector<8x8xf32>
    %cst_98 = arith.constant dense<0.000000e+00> : vector<8xf32>
    %168 = vector.multi_reduction <add>, %167, %cst_98 [1] : vector<8x8xf32> to vector<8xf32>
    %169 = vector.shape_cast %168 : vector<8xf32> to vector<8x1xf32>
    %cst_99 = arith.constant 1.000000e+00 : f32
    %170 = vector.broadcast %cst_99 : f32 to vector<8x1xf32>
    %171 = arith.divf %170, %169 : vector<8x1xf32>
    %172 = vector.broadcast %171 : vector<8x1xf32> to vector<8x8xf32>
    %173 = arith.mulf %167, %172 : vector<8x8xf32>
    %cst_100 = arith.constant dense<0.000000e+00> : vector<8x128xf32>
    %174 = tpu.matmul %173, %160, %cst_100 {dimension_numbers = #tpu.dot_dimension_numbers<[1], [0], [0], [1], [0, 0, 1, 1], [], []>} : vector<8x8xf32>, vector<8x128xf32>, vector<8x128xf32> -> vector<8x128xf32>
    %c0_101 = arith.constant 0 : index
    %c0_102 = arith.constant 0 : index
    %c0_103 = arith.constant 0 : index
    %175 = vector.load %arg3[%c0_101, %c0_102, %c0_103] : memref<8x128x32xf32, #tpu.memory_space<vmem>>, vector<1x128x32xf32>
    %176 = vector.shape_cast %175 : vector<1x128x32xf32> to vector<128x32xf32>
    %cst_104 = arith.constant dense<0.000000e+00> : vector<8x32xf32>
    %177 = tpu.matmul %174, %176, %cst_104 {dimension_numbers = #tpu.dot_dimension_numbers<[1], [0], [0], [1], [0, 0, 1, 1], [], []>} : vector<8x128xf32>, vector<128x32xf32>, vector<8x32xf32> -> vector<8x32xf32>
    %178 = arith.addf %158, %177 : vector<8x32xf32>
    %c8_105 = arith.constant 8 : index
    %c128_106 = arith.constant 128 : index
    %179 = vector.load %arg5[%c8_105, %c128_106] : memref<16x2048xf32, #tpu.memory_space<vmem>>, vector<8x128xf32>
    %cst_107 = arith.constant dense<0.000000e+00> : vector<8x8xf32>
    %180 = tpu.matmul %179, %159, %cst_107 {dimension_numbers = #tpu.dot_dimension_numbers<[1], [1], [0], [0], [0, 0, 1, 0], [], []>} : vector<8x128xf32>, vector<8x128xf32>, vector<8x8xf32> -> vector<8x8xf32>
    %cst_108 = arith.constant dense<0xFF800000> : vector<8xf32>
    %181 = vector.multi_reduction <maximumf>, %180, %cst_108 [1] : vector<8x8xf32> to vector<8xf32>
    %182 = vector.shape_cast %181 : vector<8xf32> to vector<8x1xf32>
    %183 = vector.broadcast %182 : vector<8x1xf32> to vector<8x8xf32>
    %184 = arith.subf %180, %183 : vector<8x8xf32>
    %185 = math.exp %184 : vector<8x8xf32>
    %cst_109 = arith.constant dense<0.000000e+00> : vector<8xf32>
    %186 = vector.multi_reduction <add>, %185, %cst_109 [1] : vector<8x8xf32> to vector<8xf32>
    %187 = vector.shape_cast %186 : vector<8xf32> to vector<8x1xf32>
    %cst_110 = arith.constant 1.000000e+00 : f32
    %188 = vector.broadcast %cst_110 : f32 to vector<8x1xf32>
    %189 = arith.divf %188, %187 : vector<8x1xf32>
    %190 = vector.broadcast %189 : vector<8x1xf32> to vector<8x8xf32>
    %191 = arith.mulf %185, %190 : vector<8x8xf32>
    %cst_111 = arith.constant dense<0.000000e+00> : vector<8x128xf32>
    %192 = tpu.matmul %191, %160, %cst_111 {dimension_numbers = #tpu.dot_dimension_numbers<[1], [0], [0], [1], [0, 0, 1, 1], [], []>} : vector<8x8xf32>, vector<8x128xf32>, vector<8x128xf32> -> vector<8x128xf32>
    %c1_112 = arith.constant 1 : index
    %c0_113 = arith.constant 0 : index
    %c0_114 = arith.constant 0 : index
    %193 = vector.load %arg3[%c1_112, %c0_113, %c0_114] : memref<8x128x32xf32, #tpu.memory_space<vmem>>, vector<1x128x32xf32>
    %194 = vector.shape_cast %193 : vector<1x128x32xf32> to vector<128x32xf32>
    %cst_115 = arith.constant dense<0.000000e+00> : vector<8x32xf32>
    %195 = tpu.matmul %192, %194, %cst_115 {dimension_numbers = #tpu.dot_dimension_numbers<[1], [0], [0], [1], [0, 0, 1, 1], [], []>} : vector<8x128xf32>, vector<128x32xf32>, vector<8x32xf32> -> vector<8x32xf32>
    %196 = arith.addf %178, %195 : vector<8x32xf32>
    %c8_116 = arith.constant 8 : index
    %c1152_117 = arith.constant 1152 : index
    %197 = vector.load %arg5[%c8_116, %c1152_117] : memref<16x2048xf32, #tpu.memory_space<vmem>>, vector<8x128xf32>
    %c8_118 = arith.constant 8 : index
    %c1664_119 = arith.constant 1664 : index
    %198 = vector.load %arg5[%c8_118, %c1664_119] : memref<16x2048xf32, #tpu.memory_space<vmem>>, vector<8x128xf32>
    %c8_120 = arith.constant 8 : index
    %c256_121 = arith.constant 256 : index
    %199 = vector.load %arg5[%c8_120, %c256_121] : memref<16x2048xf32, #tpu.memory_space<vmem>>, vector<8x128xf32>
    %cst_122 = arith.constant dense<0.000000e+00> : vector<8x8xf32>
    %200 = tpu.matmul %199, %197, %cst_122 {dimension_numbers = #tpu.dot_dimension_numbers<[1], [1], [0], [0], [0, 0, 1, 0], [], []>} : vector<8x128xf32>, vector<8x128xf32>, vector<8x8xf32> -> vector<8x8xf32>
    %cst_123 = arith.constant dense<0xFF800000> : vector<8xf32>
    %201 = vector.multi_reduction <maximumf>, %200, %cst_123 [1] : vector<8x8xf32> to vector<8xf32>
    %202 = vector.shape_cast %201 : vector<8xf32> to vector<8x1xf32>
    %203 = vector.broadcast %202 : vector<8x1xf32> to vector<8x8xf32>
    %204 = arith.subf %200, %203 : vector<8x8xf32>
    %205 = math.exp %204 : vector<8x8xf32>
    %cst_124 = arith.constant dense<0.000000e+00> : vector<8xf32>
    %206 = vector.multi_reduction <add>, %205, %cst_124 [1] : vector<8x8xf32> to vector<8xf32>
    %207 = vector.shape_cast %206 : vector<8xf32> to vector<8x1xf32>
    %cst_125 = arith.constant 1.000000e+00 : f32
    %208 = vector.broadcast %cst_125 : f32 to vector<8x1xf32>
    %209 = arith.divf %208, %207 : vector<8x1xf32>
    %210 = vector.broadcast %209 : vector<8x1xf32> to vector<8x8xf32>
    %211 = arith.mulf %205, %210 : vector<8x8xf32>
    %cst_126 = arith.constant dense<0.000000e+00> : vector<8x128xf32>
    %212 = tpu.matmul %211, %198, %cst_126 {dimension_numbers = #tpu.dot_dimension_numbers<[1], [0], [0], [1], [0, 0, 1, 1], [], []>} : vector<8x8xf32>, vector<8x128xf32>, vector<8x128xf32> -> vector<8x128xf32>
    %c2_127 = arith.constant 2 : index
    %c0_128 = arith.constant 0 : index
    %c0_129 = arith.constant 0 : index
    %213 = vector.load %arg3[%c2_127, %c0_128, %c0_129] : memref<8x128x32xf32, #tpu.memory_space<vmem>>, vector<1x128x32xf32>
    %214 = vector.shape_cast %213 : vector<1x128x32xf32> to vector<128x32xf32>
    %cst_130 = arith.constant dense<0.000000e+00> : vector<8x32xf32>
    %215 = tpu.matmul %212, %214, %cst_130 {dimension_numbers = #tpu.dot_dimension_numbers<[1], [0], [0], [1], [0, 0, 1, 1], [], []>} : vector<8x128xf32>, vector<128x32xf32>, vector<8x32xf32> -> vector<8x32xf32>
    %216 = arith.addf %196, %215 : vector<8x32xf32>
    %c8_131 = arith.constant 8 : index
    %c384_132 = arith.constant 384 : index
    %217 = vector.load %arg5[%c8_131, %c384_132] : memref<16x2048xf32, #tpu.memory_space<vmem>>, vector<8x128xf32>
    %cst_133 = arith.constant dense<0.000000e+00> : vector<8x8xf32>
    %218 = tpu.matmul %217, %197, %cst_133 {dimension_numbers = #tpu.dot_dimension_numbers<[1], [1], [0], [0], [0, 0, 1, 0], [], []>} : vector<8x128xf32>, vector<8x128xf32>, vector<8x8xf32> -> vector<8x8xf32>
    %cst_134 = arith.constant dense<0xFF800000> : vector<8xf32>
    %219 = vector.multi_reduction <maximumf>, %218, %cst_134 [1] : vector<8x8xf32> to vector<8xf32>
    %220 = vector.shape_cast %219 : vector<8xf32> to vector<8x1xf32>
    %221 = vector.broadcast %220 : vector<8x1xf32> to vector<8x8xf32>
    %222 = arith.subf %218, %221 : vector<8x8xf32>
    %223 = math.exp %222 : vector<8x8xf32>
    %cst_135 = arith.constant dense<0.000000e+00> : vector<8xf32>
    %224 = vector.multi_reduction <add>, %223, %cst_135 [1] : vector<8x8xf32> to vector<8xf32>
    %225 = vector.shape_cast %224 : vector<8xf32> to vector<8x1xf32>
    %cst_136 = arith.constant 1.000000e+00 : f32
    %226 = vector.broadcast %cst_136 : f32 to vector<8x1xf32>
    %227 = arith.divf %226, %225 : vector<8x1xf32>
    %228 = vector.broadcast %227 : vector<8x1xf32> to vector<8x8xf32>
    %229 = arith.mulf %223, %228 : vector<8x8xf32>
    %cst_137 = arith.constant dense<0.000000e+00> : vector<8x128xf32>
    %230 = tpu.matmul %229, %198, %cst_137 {dimension_numbers = #tpu.dot_dimension_numbers<[1], [0], [0], [1], [0, 0, 1, 1], [], []>} : vector<8x8xf32>, vector<8x128xf32>, vector<8x128xf32> -> vector<8x128xf32>
    %c3_138 = arith.constant 3 : index
    %c0_139 = arith.constant 0 : index
    %c0_140 = arith.constant 0 : index
    %231 = vector.load %arg3[%c3_138, %c0_139, %c0_140] : memref<8x128x32xf32, #tpu.memory_space<vmem>>, vector<1x128x32xf32>
    %232 = vector.shape_cast %231 : vector<1x128x32xf32> to vector<128x32xf32>
    %cst_141 = arith.constant dense<0.000000e+00> : vector<8x32xf32>
    %233 = tpu.matmul %230, %232, %cst_141 {dimension_numbers = #tpu.dot_dimension_numbers<[1], [0], [0], [1], [0, 0, 1, 1], [], []>} : vector<8x128xf32>, vector<128x32xf32>, vector<8x32xf32> -> vector<8x32xf32>
    %234 = arith.addf %216, %233 : vector<8x32xf32>
    %c8_142 = arith.constant 8 : index
    %c1280_143 = arith.constant 1280 : index
    %235 = vector.load %arg5[%c8_142, %c1280_143] : memref<16x2048xf32, #tpu.memory_space<vmem>>, vector<8x128xf32>
    %c8_144 = arith.constant 8 : index
    %c1792_145 = arith.constant 1792 : index
    %236 = vector.load %arg5[%c8_144, %c1792_145] : memref<16x2048xf32, #tpu.memory_space<vmem>>, vector<8x128xf32>
    %c8_146 = arith.constant 8 : index
    %c512_147 = arith.constant 512 : index
    %237 = vector.load %arg5[%c8_146, %c512_147] : memref<16x2048xf32, #tpu.memory_space<vmem>>, vector<8x128xf32>
    %cst_148 = arith.constant dense<0.000000e+00> : vector<8x8xf32>
    %238 = tpu.matmul %237, %235, %cst_148 {dimension_numbers = #tpu.dot_dimension_numbers<[1], [1], [0], [0], [0, 0, 1, 0], [], []>} : vector<8x128xf32>, vector<8x128xf32>, vector<8x8xf32> -> vector<8x8xf32>
    %cst_149 = arith.constant dense<0xFF800000> : vector<8xf32>
    %239 = vector.multi_reduction <maximumf>, %238, %cst_149 [1] : vector<8x8xf32> to vector<8xf32>
    %240 = vector.shape_cast %239 : vector<8xf32> to vector<8x1xf32>
    %241 = vector.broadcast %240 : vector<8x1xf32> to vector<8x8xf32>
    %242 = arith.subf %238, %241 : vector<8x8xf32>
    %243 = math.exp %242 : vector<8x8xf32>
    %cst_150 = arith.constant dense<0.000000e+00> : vector<8xf32>
    %244 = vector.multi_reduction <add>, %243, %cst_150 [1] : vector<8x8xf32> to vector<8xf32>
    %245 = vector.shape_cast %244 : vector<8xf32> to vector<8x1xf32>
    %cst_151 = arith.constant 1.000000e+00 : f32
    %246 = vector.broadcast %cst_151 : f32 to vector<8x1xf32>
    %247 = arith.divf %246, %245 : vector<8x1xf32>
    %248 = vector.broadcast %247 : vector<8x1xf32> to vector<8x8xf32>
    %249 = arith.mulf %243, %248 : vector<8x8xf32>
    %cst_152 = arith.constant dense<0.000000e+00> : vector<8x128xf32>
    %250 = tpu.matmul %249, %236, %cst_152 {dimension_numbers = #tpu.dot_dimension_numbers<[1], [0], [0], [1], [0, 0, 1, 1], [], []>} : vector<8x8xf32>, vector<8x128xf32>, vector<8x128xf32> -> vector<8x128xf32>
    %c4_153 = arith.constant 4 : index
    %c0_154 = arith.constant 0 : index
    %c0_155 = arith.constant 0 : index
    %251 = vector.load %arg3[%c4_153, %c0_154, %c0_155] : memref<8x128x32xf32, #tpu.memory_space<vmem>>, vector<1x128x32xf32>
    %252 = vector.shape_cast %251 : vector<1x128x32xf32> to vector<128x32xf32>
    %cst_156 = arith.constant dense<0.000000e+00> : vector<8x32xf32>
    %253 = tpu.matmul %250, %252, %cst_156 {dimension_numbers = #tpu.dot_dimension_numbers<[1], [0], [0], [1], [0, 0, 1, 1], [], []>} : vector<8x128xf32>, vector<128x32xf32>, vector<8x32xf32> -> vector<8x32xf32>
    %254 = arith.addf %234, %253 : vector<8x32xf32>
    %c8_157 = arith.constant 8 : index
    %c640_158 = arith.constant 640 : index
    %255 = vector.load %arg5[%c8_157, %c640_158] : memref<16x2048xf32, #tpu.memory_space<vmem>>, vector<8x128xf32>
    %cst_159 = arith.constant dense<0.000000e+00> : vector<8x8xf32>
    %256 = tpu.matmul %255, %235, %cst_159 {dimension_numbers = #tpu.dot_dimension_numbers<[1], [1], [0], [0], [0, 0, 1, 0], [], []>} : vector<8x128xf32>, vector<8x128xf32>, vector<8x8xf32> -> vector<8x8xf32>
    %cst_160 = arith.constant dense<0xFF800000> : vector<8xf32>
    %257 = vector.multi_reduction <maximumf>, %256, %cst_160 [1] : vector<8x8xf32> to vector<8xf32>
    %258 = vector.shape_cast %257 : vector<8xf32> to vector<8x1xf32>
    %259 = vector.broadcast %258 : vector<8x1xf32> to vector<8x8xf32>
    %260 = arith.subf %256, %259 : vector<8x8xf32>
    %261 = math.exp %260 : vector<8x8xf32>
    %cst_161 = arith.constant dense<0.000000e+00> : vector<8xf32>
    %262 = vector.multi_reduction <add>, %261, %cst_161 [1] : vector<8x8xf32> to vector<8xf32>
    %263 = vector.shape_cast %262 : vector<8xf32> to vector<8x1xf32>
    %cst_162 = arith.constant 1.000000e+00 : f32
    %264 = vector.broadcast %cst_162 : f32 to vector<8x1xf32>
    %265 = arith.divf %264, %263 : vector<8x1xf32>
    %266 = vector.broadcast %265 : vector<8x1xf32> to vector<8x8xf32>
    %267 = arith.mulf %261, %266 : vector<8x8xf32>
    %cst_163 = arith.constant dense<0.000000e+00> : vector<8x128xf32>
    %268 = tpu.matmul %267, %236, %cst_163 {dimension_numbers = #tpu.dot_dimension_numbers<[1], [0], [0], [1], [0, 0, 1, 1], [], []>} : vector<8x8xf32>, vector<8x128xf32>, vector<8x128xf32> -> vector<8x128xf32>
    %c5_164 = arith.constant 5 : index
    %c0_165 = arith.constant 0 : index
    %c0_166 = arith.constant 0 : index
    %269 = vector.load %arg3[%c5_164, %c0_165, %c0_166] : memref<8x128x32xf32, #tpu.memory_space<vmem>>, vector<1x128x32xf32>
    %270 = vector.shape_cast %269 : vector<1x128x32xf32> to vector<128x32xf32>
    %cst_167 = arith.constant dense<0.000000e+00> : vector<8x32xf32>
    %271 = tpu.matmul %268, %270, %cst_167 {dimension_numbers = #tpu.dot_dimension_numbers<[1], [0], [0], [1], [0, 0, 1, 1], [], []>} : vector<8x128xf32>, vector<128x32xf32>, vector<8x32xf32> -> vector<8x32xf32>
    %272 = arith.addf %254, %271 : vector<8x32xf32>
    %c8_168 = arith.constant 8 : index
    %c1408_169 = arith.constant 1408 : index
    %273 = vector.load %arg5[%c8_168, %c1408_169] : memref<16x2048xf32, #tpu.memory_space<vmem>>, vector<8x128xf32>
    %c8_170 = arith.constant 8 : index
    %c1920_171 = arith.constant 1920 : index
    %274 = vector.load %arg5[%c8_170, %c1920_171] : memref<16x2048xf32, #tpu.memory_space<vmem>>, vector<8x128xf32>
    %c8_172 = arith.constant 8 : index
    %c768_173 = arith.constant 768 : index
    %275 = vector.load %arg5[%c8_172, %c768_173] : memref<16x2048xf32, #tpu.memory_space<vmem>>, vector<8x128xf32>
    %cst_174 = arith.constant dense<0.000000e+00> : vector<8x8xf32>
    %276 = tpu.matmul %275, %273, %cst_174 {dimension_numbers = #tpu.dot_dimension_numbers<[1], [1], [0], [0], [0, 0, 1, 0], [], []>} : vector<8x128xf32>, vector<8x128xf32>, vector<8x8xf32> -> vector<8x8xf32>
    %cst_175 = arith.constant dense<0xFF800000> : vector<8xf32>
    %277 = vector.multi_reduction <maximumf>, %276, %cst_175 [1] : vector<8x8xf32> to vector<8xf32>
    %278 = vector.shape_cast %277 : vector<8xf32> to vector<8x1xf32>
    %279 = vector.broadcast %278 : vector<8x1xf32> to vector<8x8xf32>
    %280 = arith.subf %276, %279 : vector<8x8xf32>
    %281 = math.exp %280 : vector<8x8xf32>
    %cst_176 = arith.constant dense<0.000000e+00> : vector<8xf32>
    %282 = vector.multi_reduction <add>, %281, %cst_176 [1] : vector<8x8xf32> to vector<8xf32>
    %283 = vector.shape_cast %282 : vector<8xf32> to vector<8x1xf32>
    %cst_177 = arith.constant 1.000000e+00 : f32
    %284 = vector.broadcast %cst_177 : f32 to vector<8x1xf32>
    %285 = arith.divf %284, %283 : vector<8x1xf32>
    %286 = vector.broadcast %285 : vector<8x1xf32> to vector<8x8xf32>
    %287 = arith.mulf %281, %286 : vector<8x8xf32>
    %cst_178 = arith.constant dense<0.000000e+00> : vector<8x128xf32>
    %288 = tpu.matmul %287, %274, %cst_178 {dimension_numbers = #tpu.dot_dimension_numbers<[1], [0], [0], [1], [0, 0, 1, 1], [], []>} : vector<8x8xf32>, vector<8x128xf32>, vector<8x128xf32> -> vector<8x128xf32>
    %c6_179 = arith.constant 6 : index
    %c0_180 = arith.constant 0 : index
    %c0_181 = arith.constant 0 : index
    %289 = vector.load %arg3[%c6_179, %c0_180, %c0_181] : memref<8x128x32xf32, #tpu.memory_space<vmem>>, vector<1x128x32xf32>
    %290 = vector.shape_cast %289 : vector<1x128x32xf32> to vector<128x32xf32>
    %cst_182 = arith.constant dense<0.000000e+00> : vector<8x32xf32>
    %291 = tpu.matmul %288, %290, %cst_182 {dimension_numbers = #tpu.dot_dimension_numbers<[1], [0], [0], [1], [0, 0, 1, 1], [], []>} : vector<8x128xf32>, vector<128x32xf32>, vector<8x32xf32> -> vector<8x32xf32>
    %292 = arith.addf %272, %291 : vector<8x32xf32>
    %c8_183 = arith.constant 8 : index
    %c896_184 = arith.constant 896 : index
    %293 = vector.load %arg5[%c8_183, %c896_184] : memref<16x2048xf32, #tpu.memory_space<vmem>>, vector<8x128xf32>
    %cst_185 = arith.constant dense<0.000000e+00> : vector<8x8xf32>
    %294 = tpu.matmul %293, %273, %cst_185 {dimension_numbers = #tpu.dot_dimension_numbers<[1], [1], [0], [0], [0, 0, 1, 0], [], []>} : vector<8x128xf32>, vector<8x128xf32>, vector<8x8xf32> -> vector<8x8xf32>
    %cst_186 = arith.constant dense<0xFF800000> : vector<8xf32>
    %295 = vector.multi_reduction <maximumf>, %294, %cst_186 [1] : vector<8x8xf32> to vector<8xf32>
    %296 = vector.shape_cast %295 : vector<8xf32> to vector<8x1xf32>
    %297 = vector.broadcast %296 : vector<8x1xf32> to vector<8x8xf32>
    %298 = arith.subf %294, %297 : vector<8x8xf32>
    %299 = math.exp %298 : vector<8x8xf32>
    %cst_187 = arith.constant dense<0.000000e+00> : vector<8xf32>
    %300 = vector.multi_reduction <add>, %299, %cst_187 [1] : vector<8x8xf32> to vector<8xf32>
    %301 = vector.shape_cast %300 : vector<8xf32> to vector<8x1xf32>
    %cst_188 = arith.constant 1.000000e+00 : f32
    %302 = vector.broadcast %cst_188 : f32 to vector<8x1xf32>
    %303 = arith.divf %302, %301 : vector<8x1xf32>
    %304 = vector.broadcast %303 : vector<8x1xf32> to vector<8x8xf32>
    %305 = arith.mulf %299, %304 : vector<8x8xf32>
    %cst_189 = arith.constant dense<0.000000e+00> : vector<8x128xf32>
    %306 = tpu.matmul %305, %274, %cst_189 {dimension_numbers = #tpu.dot_dimension_numbers<[1], [0], [0], [1], [0, 0, 1, 1], [], []>} : vector<8x8xf32>, vector<8x128xf32>, vector<8x128xf32> -> vector<8x128xf32>
    %c7_190 = arith.constant 7 : index
    %c0_191 = arith.constant 0 : index
    %c0_192 = arith.constant 0 : index
    %307 = vector.load %arg3[%c7_190, %c0_191, %c0_192] : memref<8x128x32xf32, #tpu.memory_space<vmem>>, vector<1x128x32xf32>
    %308 = vector.shape_cast %307 : vector<1x128x32xf32> to vector<128x32xf32>
    %cst_193 = arith.constant dense<0.000000e+00> : vector<8x32xf32>
    %309 = tpu.matmul %306, %308, %cst_193 {dimension_numbers = #tpu.dot_dimension_numbers<[1], [0], [0], [1], [0, 0, 1, 1], [], []>} : vector<8x128xf32>, vector<128x32xf32>, vector<8x32xf32> -> vector<8x32xf32>
    %310 = arith.addf %292, %309 : vector<8x32xf32>
    %c8_194 = arith.constant 8 : index
    %c0_195 = arith.constant 0 : index
    %311 = vector.load %arg4[%c8_194, %c0_195] : memref<16x32xf32, #tpu.memory_space<vmem>>, vector<8x32xf32>
    tpu.vector_store %arg4[%c8_194, %c0_195], %310 {strides = array<i32>} : memref<16x32xf32, #tpu.memory_space<vmem>>, vector<8x32xf32>,
    return
  }
  func.func @transform_0(%arg0: i32) -> (i32, i32) {
    %c0_i32 = arith.constant 0 : i32
    %c0_i32_0 = arith.constant 0 : i32
    return %arg0, %c0_i32 : i32, i32
  }
  func.func @transform_1(%arg0: i32) -> (i32, i32) {
    %c0_i32 = arith.constant 0 : i32
    %c0_i32_0 = arith.constant 0 : i32
    %c0_i32_1 = arith.constant 0 : i32
    return %c0_i32, %c0_i32_0 : i32, i32
  }
  func.func @transform_2(%arg0: i32) -> (i32, i32, i32) {
    %c0_i32 = arith.constant 0 : i32
    %c0_i32_0 = arith.constant 0 : i32
    %c0_i32_1 = arith.constant 0 : i32
    %c0_i32_2 = arith.constant 0 : i32
    return %c0_i32, %c0_i32_0, %c0_i32_1 : i32, i32, i32
  }
  func.func @transform_3(%arg0: i32) -> (i32, i32) {
    %c0_i32 = arith.constant 0 : i32
    %c0_i32_0 = arith.constant 0 : i32
    return %arg0, %c0_i32 : i32, i32
  }
}

</mosaic_0001>

<bundles_post_ra>
// kernel: tpu_custom_call.1
= control target key start
LH: loop header
LB: loop body
LE: loop exit
PB: predicated region body
PF: predicated region fallthrough
CT: control target
= control target key end

     0   :  { %vm81_vm0 = vcmask 261120   ;;  %s3944_s0 = inlined_call_operand.vmem [shape: f32[16,32], index: 0, kind: input, shape index: {}]   ;;  %s3945_s1 = inlined_call_operand.vmem [shape: f32[32,2048], index: 1, kind: input, shape index: {}]   ;;  %s3946_s2 = inlined_call_operand.vmem [shape: f32[8,128,32], index: 2, kind: input, shape index: {}]   ;;  %s3947_s3 = inlined_call_operand.hbm [shape: f32[16,32], index: 3, kind: output, shape index: {}]  }
   0x1   :  { %v65_v0 = vld [vmem:[%s3945_s1 + $0x180] sm:$0xff]  ;;  %v2637_v5 = vld [vmem:[%s3944_s0 + $0x8] sm:$0xff]  ;;  %v67_v6 = vld [vmem:[%s3945_s1 + $0x190] sm:$0xff] }
   0x2   :  { %v49_v1 = vld [vmem:[%s3945_s1 + $0x100] sm:$0xff]  ;;  %100 = vmatpush.msra.mxu0 %v65_v0  ;;  %2496 = vmatpush.msra.mxu1 %v65_v0  ;;  %v66_v7 = vld [vmem:[%s3945_s1 + $0x188] sm:$0xff] }
   0x3   :  { %v33_v2 = vld [vmem:[%s3945_s1 + $0x80] sm:$0xff] }
   0x4   :  { %101 = vmatpush.msra.mxu0 %v49_v1  ;;  %2497 = vmatpush.msra.mxu1 %v49_v1  ;;  %v17_v3 = vld [vmem:[%s3945_s1] sm:$0xff] }
   0x5   :  { %v2632_v4 = vld [vmem:[%s3944_s0] sm:$0xff] }
   0x6   :  { %102 = vmatpush.msra.mxu0 %v33_v2  ;;  %2498 = vmatpush.msra.mxu1 %v33_v2 }
   0x8   :  { %103 = vmatpush.msra.mxu0 %v17_v3  ;;  %2499 = vmatpush.msra.mxu1 %v17_v3 }
   0x9   :  { %8 = vsyncpa [#allocation4], 0  ;;  %2224 = vmatmul.msk.f32.vlgmr.msra.gmra.mxu0 %vm81_vm0, %v2632_v4  ;;  %v51_v8 = vld [vmem:[%s3945_s1 + $0x110] sm:$0xff]  ;;  %2225 = vmatmul.msk.f32.vlgmr.msra.gmra.mxu1 %vm81_vm0, %v2637_v5  ;;  %v50_v9 = vld [vmem:[%s3945_s1 + $0x108] sm:$0xff]  ;;  %vm511_vm1 = vcmask 64512   ;;  %s2594_s9 = smov [#allocation3]  }
   0xa   :  { %146 = vmatpush.msrb.mxu0 %v67_v6  ;;  %123 = vmatpush.msrb.mxu1 %v66_v7  ;;  %v35_v10 = vld [vmem:[%s3945_s1 + $0x90] sm:$0xff]  ;;  %v34_v11 = vld [vmem:[%s3945_s1 + $0x88] sm:$0xff]  ;;  %v69_v14 = vld [vmem:[%s3945_s1 + $0x1a0] sm:$0xff]  ;;  %s2210_s10 = sshll.u32 %s2594_s9, 4  ;;  %s2595_s13 = smov 128   ;;  %s2211_s10 = int_to_ptr.vmem [resolvable:$true] %s2210_s10 }
   0xb   :  { %v19_v12 = vld [vmem:[%s3945_s1 + $0x10] sm:$0xff]  ;;  %v18_v13 = vld [vmem:[%s3945_s1 + $0x8] sm:$0xff]  ;;  %v53_v16 = vld [vmem:[%s3945_s1 + $0x120] sm:$0xff]  ;;  %s2596_s14 = smov 8  }
   0xc   :  { %147 = vmatpush.msrb.mxu0 %v51_v8  ;;  %124 = vmatpush.msrb.mxu1 %v50_v9  ;;  %v70_v15 = vld [vmem:[%s3945_s1 + $0x1a8] sm:$0xff]  ;;  %v71_v18 = vld [vmem:[%s3945_s1 + $0x1b0] sm:$0xff]  ;;  %v37_v20 = vld [vmem:[%s3945_s1 + $0xa0] sm:$0xff] }
   0xd   :  { %v54_v17 = vld [vmem:[%s3945_s1 + $0x128] sm:$0xff]  ;;  %v55_v19 = vld [vmem:[%s3945_s1 + $0x130] sm:$0xff]  ;;  %238 = vmatpush.msra.mxu2 %v71_v18  ;;  %v21_v23 = vld [vmem:[%s3945_s1 + $0x20] sm:$0xff] }
   0xe   :  { %148 = vmatpush.msrb.mxu0 %v35_v10  ;;  %125 = vmatpush.msrb.mxu1 %v34_v11  ;;  %v38_v21 = vld [vmem:[%s3945_s1 + $0xa8] sm:$0xff]  ;;  %v39_v22 = vld [vmem:[%s3945_s1 + $0xb0] sm:$0xff]  ;;  %v73_v25 = vld [vmem:[%s3945_s1 + $0x1c0] sm:$0xff] }
   0xf   :  { %v22_v24 = vld [vmem:[%s3945_s1 + $0x28] sm:$0xff]  ;;  %239 = vmatpush.msra.mxu2 %v55_v19  ;;  %v23_v27 = vld [vmem:[%s3945_s1 + $0x30] sm:$0xff]  ;;  %v57_v28 = vld [vmem:[%s3945_s1 + $0x140] sm:$0xff] }
  0x10   :  { %149 = vmatpush.msrb.mxu0 %v19_v12  ;;  %126 = vmatpush.msrb.mxu1 %v18_v13  ;;  %v74_v26 = vld [vmem:[%s3945_s1 + $0x1c8] sm:$0xff]  ;;  %v41_v30 = vld [vmem:[%s3945_s1 + $0xc0] sm:$0xff]  ;;  %v75_v34 = vld [vmem:[%s3945_s1 + $0x1d0] sm:$0xff] }
  0x11   :  { %2228 = vmatmul.msk.f32.vlgmr.msrb.gmra.mxu0 %vm81_vm0, %v2632_v4  ;;  %2226 = vmatmul.msk.f32.vlgmr.msrb.gmra.mxu1 %vm81_vm0, %v2632_v4  ;;  %v58_v29 = vld [vmem:[%s3945_s1 + $0x148] sm:$0xff]  ;;  %v25_v32 = vld [vmem:[%s3945_s1 + $0x40] sm:$0xff]  ;;  %v59_v35 = vld [vmem:[%s3945_s1 + $0x150] sm:$0xff] }
  0x12   :  { %192 = vmatpush.msra.mxu0 %v69_v14  ;;  %215 = vmatpush.msra.mxu1 %v70_v15  ;;  %v42_v31 = vld [vmem:[%s3945_s1 + $0xc8] sm:$0xff]  ;;  %v43_v36 = vld [vmem:[%s3945_s1 + $0xd0] sm:$0xff]  ;;  %v77_v38 = vld [vmem:[%s3945_s1 + $0x1e0] sm:$0xff] }
  0x13   :  { %240 = vmatpush.msra.mxu2 %v39_v22  ;;  %v26_v33 = vld [vmem:[%s3945_s1 + $0x48] sm:$0xff]  ;;  %v27_v37 = vld [vmem:[%s3945_s1 + $0x50] sm:$0xff]  ;;  %v61_v40 = vld [vmem:[%s3945_s1 + $0x160] sm:$0xff] }
  0x14   :  { %193 = vmatpush.msra.mxu0 %v53_v16  ;;  %216 = vmatpush.msra.mxu1 %v54_v17  ;;  %v79_v39 = vld [vmem:[%s3945_s1 + $0x1f0] sm:$0xff]  ;;  %v45_v42 = vld [vmem:[%s3945_s1 + $0xe0] sm:$0xff]  ;;  %v2273_v56 = vld [vmem:[%s3946_s2 + $0xf8] sm:$0xff] }
  0x15   :  { %241 = vmatpush.msra.mxu2 %v23_v27  ;;  %v63_v41 = vld [vmem:[%s3945_s1 + $0x170] sm:$0xff]  ;;  %v29_v44 = vld [vmem:[%s3945_s1 + $0x60] sm:$0xff]  ;;  %v2290_v60 = vld [vmem:[%s3946_s2 + $0x178] sm:$0xff] }
  0x16   :  { %194 = vmatpush.msra.mxu0 %v37_v20  ;;  %217 = vmatpush.msra.mxu1 %v38_v21  ;;  %v47_v43 = vld [vmem:[%s3945_s1 + $0xf0] sm:$0xff]  ;;  %v2271_v61 = vld [vmem:[%s3946_s2 + $0xe8] sm:$0xff]  ;;  %v2270_v62 = vld [vmem:[%s3946_s2 + $0xe0] sm:$0xff] }
  0x17   :  { %2236 = vmatmul.msk.f32.vlgmr.msra.gmra.mxu2 %vm81_vm0, %v2632_v4  ;;  %v31_v45 = vld [vmem:[%s3945_s1 + $0x70] sm:$0xff]  ;;  %v2269_v63 = vld [vmem:[%s3946_s2 + $0xd8] sm:$0xff]  ;;  %v2267_v1 = vld [vmem:[%s3946_s2 + $0xc8] sm:$0xff] }
  0x18   :  { %195 = vmatpush.msra.mxu0 %v21_v23  ;;  %218 = vmatpush.msra.mxu1 %v22_v24  ;;  %v2272_v59 = vld [vmem:[%s3946_s2 + $0xf0] sm:$0xff]  ;;  %v2266_v2 = vld [vmem:[%s3946_s2 + $0xc0] sm:$0xff]  ;;  %v2265_v3 = vld [vmem:[%s3946_s2 + $0xb8] sm:$0xff] }
  0x19   :  { %2229 = vmatmul.msk.f32.gmra.mxu0 %vm81_vm0, %v2637_v5  ;;  %2227 = vmatmul.msk.f32.gmra.mxu1 %vm81_vm0, %v2637_v5  ;;  %v2268_v0 = vld [vmem:[%s3946_s2 + $0xd0] sm:$0xff]  ;;  %v2263_v8 = vld [vmem:[%s3946_s2 + $0xa8] sm:$0xff]  ;;  %v2262_v10 = vld [vmem:[%s3946_s2 + $0xa0] sm:$0xff] }
  0x1a   :  { %284 = vmatpush.msrb.mxu0 %v73_v25  ;;  %307 = vmatpush.msrb.mxu1 %v74_v26  ;;  %v2264_v6 = vld [vmem:[%s3946_s2 + $0xb0] sm:$0xff]  ;;  %v2865_v9 = vld [vmem:[%s3946_s2 + $0x168] sm:$0xff]  ;;  %v2873_v11 = vld [vmem:[%s3946_s2 + $0x160] sm:$0xff] }
  0x1b   :  { %330 = vmatpush.msrb.mxu2 %v75_v34  ;;  %v2856_v7 = vld [vmem:[%s3946_s2 + $0x170] sm:$0xff]  ;;  %v2261_v12 = vld [vmem:[%s3946_s2 + $0x98] sm:$0xff]  ;;  %v2259_v16 = vld [vmem:[%s3946_s2 + $0x88] sm:$0xff] }
  0x1c   :  { %285 = vmatpush.msrb.mxu0 %v57_v28  ;;  %308 = vmatpush.msrb.mxu1 %v58_v29  ;;  %v2882_v13 = vld [vmem:[%s3946_s2 + $0x158] sm:$0xff]  ;;  %v2260_v14 = vld [vmem:[%s3946_s2 + $0x90] sm:$0xff]  ;;  %v2901_v17 = vld [vmem:[%s3946_s2 + $0x148] sm:$0xff] }
  0x1d   :  { %331 = vmatpush.msrb.mxu2 %v59_v35  ;;  %v2892_v15 = vld [vmem:[%s3946_s2 + $0x150] sm:$0xff]  ;;  %v2258_v18 = vld [vmem:[%s3946_s2 + $0x80] sm:$0xff]  ;;  %v2917_v21 = vld [vmem:[%s3946_s2 + $0x138] sm:$0xff] }
  0x1e   :  { %286 = vmatpush.msrb.mxu0 %v41_v30  ;;  %309 = vmatpush.msrb.mxu1 %v42_v31  ;;  %v2910_v19 = vld [vmem:[%s3946_s2 + $0x140] sm:$0xff]  ;;  %v2924_v22 = vld [vmem:[%s3946_s2 + $0x130] sm:$0xff]  ;;  %v2930_v23 = vld [vmem:[%s3946_s2 + $0x128] sm:$0xff] }
  0x1f   :  { %2237 = vmatmul.msk.f32.gmra.mxu2 %vm81_vm0, %v2637_v5  ;;  %v2935_v24 = vld [vmem:[%s3946_s2 + $0x120] sm:$0xff]  ;;  %v2941_v25 = vld [vmem:[%s3946_s2 + $0x118] sm:$0xff]  ;;  %v2950_v27 = vld [vmem:[%s3946_s2 + $0x110] sm:$0xff] }
  0x20   :  { %287 = vmatpush.msrb.mxu0 %v25_v32  ;;  %310 = vmatpush.msrb.mxu1 %v26_v33  ;;  %v2961_v30 = vld [vmem:[%s3946_s2 + $0x108] sm:$0xff]  ;;  %v2967_v31 = vld [vmem:[%s3946_s2 + $0x100] sm:$0xff] }
  0x21   :  { %2232 = vmatmul.msk.f32.vlgmr.msra.gmra.mxu0 %vm81_vm0, %v2632_v4  ;;  %2234 = vmatmul.msk.f32.vlgmr.msra.gmra.mxu1 %vm81_vm0, %v2632_v4  ;;  %3980 = vst [vmem:[#allocation10_spill] sm:$0xff] %v2961_v30 }
  0x22   :  { %332 = vmatpush.msrb.mxu2 %v43_v36  ;;  %376 = vmatpush.msra.mxu0 %v77_v38  ;;  %3981 = vst [vmem:[#allocation11_spill] sm:$0xff] %v2967_v31 }
  0x24   :  { %333 = vmatpush.msrb.mxu2 %v27_v37  ;;  %377 = vmatpush.msra.mxu0 %v61_v40 }
  0x26   :  { %422 = vmatpush.msra.mxu2 %v79_v39  ;;  %378 = vmatpush.msra.mxu0 %v45_v42  ;;  %v52_v42 = vld [vmem:[%s3945_s1 + $0x118] sm:$0xff] }
  0x27   :  { %2244 = vmatmul.msk.f32.vlgmr.msrb.gmra.mxu2 %vm81_vm0, %v2632_v4 }
  0x28   :  { %423 = vmatpush.msra.mxu2 %v63_v41  ;;  %379 = vmatpush.msra.mxu0 %v29_v44  ;;  %v68_v41 = vld [vmem:[%s3945_s1 + $0x198] sm:$0xff]  ;;  %v78_v44 = vld [vmem:[%s3945_s1 + $0x1e8] sm:$0xff] }
  0x29   :  { %2233 = vmatmul.msk.f32.gmra.mxu0 %vm81_vm0, %v2637_v5  ;;  %2235 = vmatmul.msk.f32.gmra.mxu1 %vm81_vm0, %v2637_v5 }
  0x2a   :  { %424 = vmatpush.msra.mxu2 %v47_v43  ;;  %169 = vmatpush.msra.mxu3 %v68_v41  ;;  %v36_v43 = vld [vmem:[%s3945_s1 + $0x98] sm:$0xff] }
  0x2b   :  { %399 = vmatpush.msra.mxu1 %v78_v44 }
  0x2c   :  { %425 = vmatpush.msra.mxu2 %v31_v45  ;;  %170 = vmatpush.msra.mxu3 %v52_v42  ;;  %v62_v45 = vld [vmem:[%s3945_s1 + $0x168] sm:$0xff] }
  0x2d   :  { %400 = vmatpush.msra.mxu1 %v62_v45  ;;  %v3099_v45 = vld [vmem:[%s3946_s2 + $0x48] sm:$0xff] }
  0x2e   :  { %171 = vmatpush.msra.mxu3 %v36_v43 }
  0x2f   :  { %2245 = vmatmul.msk.f32.gmra.mxu2 %vm81_vm0, %v2637_v5 }
  0x31   :  { %2240 = vmatmul.msk.f32.vlgmr.msrb.gmra.mxu0 %vm81_vm0, %v2632_v4  ;;  %2242 = vmatmul.msk.f32.vlgmr.msrb.gmra.mxu1 %vm81_vm0, %v2632_v4 }
  0x37   :  { %2252 = vmatmul.msk.f32.vlgmr.msra.gmra.mxu2 %vm81_vm0, %v2632_v4 }
  0x39   :  { %2241 = vmatmul.msk.f32.gmra.mxu0 %vm81_vm0, %v2637_v5  ;;  %2243 = vmatmul.msk.f32.gmra.mxu1 %vm81_vm0, %v2637_v5 }
  0x3f   :  { %2253 = vmatmul.msk.f32.gmra.mxu2 %vm81_vm0, %v2637_v5 }
  0x41   :  { %2248 = vmatmul.msk.f32.vlgmr.msra.gmra.mxu0 %vm81_vm0, %v2632_v4 }
  0x49   :  { %2249 = vmatmul.msk.f32.gmra.mxu0 %vm81_vm0, %v2637_v5 }
  0x86   :  { %v105_v46 = vpop.f32.mrf.mxu0  ;;  %v2799_v47 = vpop.f32.mrf.mxu1 }
  0x8e   :  { %v151_v48 = vpop.f32.mrf.mxu0  ;;  %v128_v49 = vpop.f32.mrf.mxu1 }
  0x96   :  { %v2805_v50 = vpop.f32.mrf.mxu0  ;;  %v2807_v51 = vpop.f32.mrf.mxu1 }
  0x97   :  { %3976 = vst [vmem:[#allocation6_spill] sm:$0xff] %v2805_v50 }
  0x9a   :  { %v2912_v20 = vpop.f32.mrf.mxu2 }
  0x9e   :  { %v2809_v52 = vpop.f32.mrf.mxu0  ;;  %v2811_v53 = vpop.f32.mrf.mxu1 }
  0xa2   :  { %v2944_v26 = vpop.f32.mrf.mxu2 }
  0xa3   :  { %3979 = vst [vmem:[#allocation9_spill] sm:$0xff] %v2944_v26 }
  0xa6   :  { %v2813_v54 = vpop.f32.mrf.mxu0  ;;  %v2815_v55 = vpop.f32.mrf.mxu1 }
  0xa7   :  { %3977 = vst [vmem:[#allocation7_spill] sm:$0xff] %v2813_v54 }
  0xa8   :  { %3978 = vst [vmem:[#allocation8_spill] sm:$0xff] %v2815_v55 }
  0xaa   :  { %v2953_v28 = vpop.f32.mrf.mxu2 }
  0xae   :  { %v289_v57 = vpop.f32.mrf.mxu0  ;;  %v2820_v58 = vpop.f32.mrf.mxu1 }
  0xaf   :  { %506 = vmatpush.xpose.msrb.mxu0 %v289_v57  ;;  %592 = vmatpush.xpose.msrb.mxu2 %v289_v57  ;;  %v72_v57 = vld [vmem:[%s3945_s1 + $0x1b8] sm:$0xff] }
  0xb2   :  { %507 = vmatmul.f32.vlgmr.msrb.gmra.mxu0 %v105_v46  ;;  %593 = vmatmul.f32.vlgmr.msrb.gmra.mxu2 %v128_v49  ;;  %v2956_v29 = vpop.f32.mrf.mxu2  ;;  %v20_v46 = vld [vmem:[%s3945_s1 + $0x18] sm:$0xff] }
  0xb3   :  { %720 = vmatpush.xpose.msra.mxu2 %v2820_v58  ;;  %662 = vmatpush.msra.mxu0 %v2273_v56 }
  0xb4   :  { %172 = vmatpush.msra.mxu3 %v20_v46  ;;  %v80_v46 = vld [vmem:[%s3945_s1 + $0x1f8] sm:$0xff] }
  0xb5   :  { %663 = vmatpush.msra.mxu0 %v2272_v59  ;;  %v30_v59 = vld [vmem:[%s3945_s1 + $0x68] sm:$0xff]  ;;  %2230 = vmatmul.msk.f32.vlgmr.msra.gmra.mxu3 %vm81_vm0, %v2632_v4 }
  0xb6   :  { %v2973_v33 = vpop.f32.mrf.mxu0  ;;  %261 = vmatpush.msrb.mxu3 %v72_v57  ;;  %v48_v57 = vld [vmem:[%s3945_s1 + $0xf8] sm:$0xff] }
  0xb7   :  { %790 = vmatpush.msrb.mxu2 %v2290_v60  ;;  %664 = vmatpush.msra.mxu0 %v2271_v61  ;;  %v56_v61 = vld [vmem:[%s3945_s1 + $0x138] sm:$0xff] }
  0xb8   :  { %262 = vmatpush.msrb.mxu3 %v56_v61  ;;  %v3135_v61 = vld [vmem:[%s3946_s2 + $0x28] sm:$0xff] }
  0xb9   :  { %665 = vmatpush.msra.mxu0 %v2270_v62  ;;  %791 = vmatpush.msrb.mxu2 %v2856_v7  ;;  %v3018_v62 = vld [vmem:[%s3946_s2 + $0x78] sm:$0xff] }
  0xba   :  { %721 = vmatmul.f32.vlgmr.msra.gmra.mxu2 %v151_v48  ;;  %v2969_v32 = vpop.f32.mrf.mxu2  ;;  %v46_v48 = vld [vmem:[%s3945_s1 + $0xe8] sm:$0xff] }
  0xbb   :  { %666 = vmatpush.msra.mxu0 %v2269_v63  ;;  %792 = vmatpush.msrb.mxu2 %v2865_v9  ;;  %v40_v63 = vld [vmem:[%s3945_s1 + $0xb8] sm:$0xff] }
  0xbc   :  { %401 = vmatpush.msra.mxu1 %v46_v48  ;;  %263 = vmatpush.msrb.mxu3 %v40_v63  ;;  %v3108_v48 = vld [vmem:[%s3946_s2 + $0x40] sm:$0xff] }
  0xbd   :  { %667 = vmatpush.msra.mxu0 %v2268_v0  ;;  %793 = vmatpush.msrb.mxu2 %v2873_v11  ;;  %v3143_v63 = vld [vmem:[%s3946_s2 + $0x20] sm:$0xff] }
  0xbe   :  { %v2975_v34 = vpop.f32.mrf.mxu0  ;;  %402 = vmatpush.msra.mxu1 %v30_v59  ;;  %2231 = vmatmul.msk.f32.gmra.mxu3 %vm81_vm0, %v2637_v5  ;;  %v3126_v59 = vld [vmem:[%s3946_s2 + $0x30] sm:$0xff] }
  0xbf   :  { %668 = vmatpush.msra.mxu0 %v2267_v1  ;;  %794 = vmatpush.msrb.mxu2 %v2882_v13  ;;  %v3029_v1 = vld [vmem:[%s3946_s2 + $0x70] sm:$0xff] }
  0xc0   :  { %555 = vmatpush.msrb.mxu1 %v2975_v34 }
  0xc1   :  { %669 = vmatpush.msra.mxu0 %v2266_v2  ;;  %795 = vmatpush.msrb.mxu2 %v2892_v15 }
  0xc2   :  { %v2979_v36 = vpop.f32.mrf.mxu2  ;;  %2250 = vmatmul.msk.f32.vlgmr.msra.gmra.mxu1 %vm81_vm0, %v2632_v4 }
  0xc3   :  { %670 = vmatpush.msra.mxu0 %v2265_v3  ;;  %796 = vmatpush.msrb.mxu2 %v2901_v17  ;;  %3982 = vst [vmem:[#allocation12_spill] sm:$0xff] %v2979_v36  ;;  %v24_v3 = vld [vmem:[%s3945_s1 + $0x38] sm:$0xff] }
  0xc4   :  { %682 = vmatpush.msra.mxu1 %v3018_v62  ;;  %264 = vmatpush.msrb.mxu3 %v24_v3  ;;  %v3173_v3 = vpop.f32.mrf.mxu1 }
  0xc5   :  { %671 = vmatpush.msra.mxu0 %v2264_v6  ;;  %797 = vmatpush.msrb.mxu2 %v2910_v19  ;;  %v3038_v6 = vld [vmem:[%s3946_s2 + $0x68] sm:$0xff]  ;;  %3983 = vst [vmem:[#allocation13_spill] sm:$0xff] %v3173_v3 }
  0xc6   :  { %v2977_v35 = vpop.f32.mrf.mxu0  ;;  %683 = vmatpush.msra.mxu1 %v3029_v1  ;;  %2238 = vmatmul.msk.f32.vlgmr.msrb.gmra.mxu3 %vm81_vm0, %v2632_v4 }
  0xc7   :  { %672 = vmatpush.msra.mxu0 %v2263_v8  ;;  %798 = vmatpush.msrb.mxu2 %v2917_v21 }
  0xc8   :  { %684 = vmatpush.msra.mxu1 %v3038_v6 }
  0xc9   :  { %673 = vmatpush.msra.mxu0 %v2262_v10  ;;  %799 = vmatpush.msrb.mxu2 %v2924_v22  ;;  %v76_v10 = vld [vmem:[%s3945_s1 + $0x1d8] sm:$0xff] }
  0xca   :  { %353 = vmatpush.msra.mxu3 %v76_v10  ;;  %2251 = vmatmul.msk.f32.gmra.mxu1 %vm81_vm0, %v2637_v5 }
  0xcb   :  { %674 = vmatpush.msra.mxu0 %v2261_v12  ;;  %800 = vmatpush.msrb.mxu2 %v2930_v23  ;;  %v3047_v12 = vld [vmem:[%s3946_s2 + $0x60] sm:$0xff] }
  0xcc   :  { %685 = vmatpush.msra.mxu1 %v3047_v12 }
  0xcd   :  { %675 = vmatpush.msra.mxu0 %v2260_v14  ;;  %801 = vmatpush.msrb.mxu2 %v2935_v24 }
  0xce   :  { %2239 = vmatmul.msk.f32.gmra.mxu3 %vm81_vm0, %v2637_v5 }
  0xcf   :  { %676 = vmatpush.msra.mxu0 %v2259_v16  ;;  %802 = vmatpush.msrb.mxu2 %v2941_v25  ;;  %v60_v16 = vld [vmem:[%s3945_s1 + $0x158] sm:$0xff] }
  0xd0   :  { %354 = vmatpush.msra.mxu3 %v60_v16 }
  0xd1   :  { %677 = vmatpush.msra.mxu0 %v2258_v18  ;;  %803 = vmatpush.msrb.mxu2 %v2950_v27 }
  0xd3   :  { %936 = vmatpush.xpose.msrb.mxu0 %v2953_v28  ;;  %804 = vmatpush.msrb.mxu2 %v2961_v30 }
  0xd5   :  { %805 = vmatpush.msrb.mxu2 %v2967_v31 }
  0xd7   :  { %1091 = vmatpush.msra.mxu2 %v2969_v32 }
 0x12f   :  { %v508_v37 = vpop.f32.mrf.mxu0 }
 0x130   :  { %v512_v38 = vsel %vm511_vm1, %v508_v37, -inf }
 0x131   :  { %513 = vmax.xlane.f32.xlu1 %v512_v38  ;;  %v44_v38 = vld [vmem:[%s3945_s1 + $0xd8] sm:$0xff] }
 0x132   :  { %355 = vmatpush.msra.mxu3 %v44_v38 }
 0x135   :  { %v594_v39 = vpop.f32.mrf.mxu2 }
 0x136   :  { %v597_v40 = vsel %vm511_vm1, %v594_v39, -inf }
 0x137   :  { %598 = vmax.xlane.f32.xlu0 %v597_v40  ;;  %v28_v40 = vld [vmem:[%s3945_s1 + $0x58] sm:$0xff] }
 0x138   :  { %356 = vmatpush.msra.mxu3 %v28_v40 }
 0x139   :  { %2246 = vmatmul.msk.f32.vlgmr.msra.gmra.mxu3 %vm81_vm0, %v2632_v4 }
 0x13a   :  { %445 = vmatpush.msrb.mxu3 %v80_v46 }
 0x13d   :  { %v3086_v43 = vpop.f32.mrf.mxu2 }
 0x13e   :  { %v725_v44 = vsel %vm511_vm1, %v3086_v43, -inf }
 0x141   :  { %2247 = vmatmul.msk.f32.gmra.mxu3 %vm81_vm0, %v2637_v5 }
 0x1a4   :  { %v514_v49 = vpop.xlane.xlu1 %513 }
 0x1a5   :  { %v515_v56 = vsub.f32 %v508_v37, %v514_v49  ;;  %v3062_v37 = vld [vmem:[%s3946_s2 + $0x58] sm:$0xff] }
 0x1a6   :  { %686 = vmatpush.msra.mxu1 %v3062_v37  ;;  %v64_v49 = vld [vmem:[%s3945_s1 + $0x178] sm:$0xff] }
 0x1a7   :  { %v516_v60 = vmul.f32 1.442695, %v515_v56  ;;  %v3117_v56 = vld [vmem:[%s3946_s2 + $0x38] sm:$0xff]  ;;  %446 = vmatpush.msrb.mxu3 %v64_v49 }
 0x1a9   :  { %2503 = vpow2.f32 %v516_v60  ;;  %447 = vmatpush.msrb.mxu3 %v48_v57  ;;  %v32_v60 = vld [vmem:[%s3945_s1 + $0x78] sm:$0xff] }
 0x1aa   :  { %v599_v0 = vpop.xlane.xlu0 %598 }
 0x1ab   :  { %v600_v2 = vsub.f32 %v594_v39, %v599_v0  ;;  %v3071_v39 = vld [vmem:[%s3946_s2 + $0x50] sm:$0xff]  ;;  %448 = vmatpush.msrb.mxu3 %v32_v60  ;;  %v3150_v0 = vld [vmem:[%s3946_s2 + $0x18] sm:$0xff] }
 0x1ac   :  { %687 = vmatpush.msra.mxu1 %v3071_v39  ;;  %2254 = vmatmul.msk.f32.vlgmr.msrb.gmra.mxu3 %vm81_vm0, %v2632_v4  ;;  %v3156_v4 = vld [vmem:[%s3946_s2 + $0x10] sm:$0xff] }
 0x1ad   :  { %v601_v8 = vmul.f32 1.442695, %v600_v2  ;;  %640 = vmatpush.msra.mxu3 %v2975_v34  ;;  %v3162_v2 = vld [vmem:[%s3946_s2 + $0x8] sm:$0xff]  ;;  %v3170_v34 = vld [vmem:[%s3946_s2] sm:$0xff] }
 0x1ae   :  { %688 = vmatpush.msra.mxu1 %v3099_v45 }
 0x1af   :  { %v3049_v14 = vpop.eup %2503  ;;  %2505 = vpow2.f32 %v601_v8 }
 0x1b0   :  { %v518_v18 = vsel %vm511_vm1, %v3049_v14, 0.0  ;;  %689 = vmatpush.msra.mxu1 %v3108_v48 }
 0x1b1   :  { %519 = vadd.xlane.f32.xlu1 %v518_v18  ;;  %v3175_v18 = vpop.f32.mrf.mxu1 }
 0x1b2   :  { %690 = vmatpush.msra.mxu1 %v3117_v56  ;;  %768 = vmatpush.msrb.mxu3 %v3175_v18 }
 0x1b4   :  { %691 = vmatpush.msra.mxu1 %v3126_v59  ;;  %2255 = vmatmul.msk.f32.gmra.mxu3 %vm81_vm0, %v2637_v5 }
 0x1b5   :  { %v3079_v41 = vpop.eup %2505 }
 0x1b6   :  { %v603_v42 = vsel %vm511_vm1, %v3079_v41, 0.0  ;;  %692 = vmatpush.msra.mxu1 %v3135_v61 }
 0x1b7   :  { %604 = vadd.xlane.f32.xlu0 %v603_v42 }
 0x1b8   :  { %693 = vmatpush.msra.mxu1 %v3143_v63 }
 0x1ba   :  { %694 = vmatpush.msra.mxu1 %v3150_v0 }
 0x1bc   :  { %695 = vmatpush.msra.mxu1 %v3156_v4 }
 0x1be   :  { %696 = vmatpush.msra.mxu1 %v3162_v2 }
 0x1bf   :  { %726 = vmax.xlane.f32.xlu0 %v725_v44 }
 0x1c0   :  { %697 = vmatpush.msra.mxu1 %v3170_v34 }
 0x224   :  { %v520_v8 = vpop.xlane.xlu1 %519 }
 0x225   :  { %2507 = vrcp.f32 %v520_v8  ;;  %v532_v40 = vand.u32 2147483648, %v520_v8  ;;  %v530_v44 = vand.u32 2147483647, %v520_v8  ;;  %vm526_vm3 = vweird.f32 %v520_v8 }
 0x227   :  { %v533_v26 = vor.u32 1.1754944e-38, %v532_v40  ;;  %vm531_vm5 = vcmp.eq.f32.partialorder %v530_v44, 8.507059e+37 }
 0x22a   :  { %v605_v10 = vpop.xlane.xlu0 %604 }
 0x22b   :  { %v2508_v16 = vpop.eup %2507  ;;  %2509 = vrcp.f32 %v605_v10  ;;  %v617_v36 = vand.u32 2147483648, %v605_v10  ;;  %vm611_vm7 = vweird.f32 %v605_v10 }
 0x22c   :  { %v522_v38 = vmul.f32 %v2508_v16, %v520_v8  ;;  %vm527_vm2 = vweird.f32 %v2508_v16 }
 0x22d   :  { %vm528_vm4 = vmor %vm526_vm3, %vm527_vm2  ;;  %v618_v8 = vor.u32 1.1754944e-38, %v617_v36 }
 0x22e   :  { %v523_v5 = vsub.f32 1.0, %v522_v38 }
 0x230   :  { %v524_v42 = vmul.f32 %v2508_v16, %v523_v5  ;;  %v615_v5 = vand.u32 2147483647, %v605_v10 }
 0x231   :  { %v2510_v46 = vpop.eup %2509 }
 0x232   :  { %v525_v49 = vadd.f32 %v2508_v16, %v524_v42  ;;  %v607_v57 = vmul.f32 %v2510_v46, %v605_v10  ;;  %v727_v60 = vpop.xlane.xlu0 %726  ;;  %vm612_vm6 = vweird.f32 %v2510_v46  ;;  %vm616_vm9 = vcmp.eq.f32.partialorder %v615_v5, 8.507059e+37 }
 0x233   :  { %v728_v55 = vsub.f32 %v3086_v43, %v727_v60  ;;  %vm613_vm8 = vmor %vm611_vm7, %vm612_vm6 }
 0x234   :  { %v529_v54 = vsel %vm528_vm4, %v2508_v16, %v525_v49  ;;  %v608_v50 = vsub.f32 1.0, %v607_v57 }
 0x235   :  { %v534_v3 = vsel %vm531_vm5, %v533_v26, %v529_v54  ;;  %v729_v31 = vmul.f32 1.442695, %v728_v55  ;;  %v174_v26 = vpop.f32.mrf.mxu3 }
 0x236   :  { %v609_v38 = vmul.f32 %v2510_v46, %v608_v50  ;;  %v536_v30 = vmul.f32 %v3049_v14, %v534_v3 }
 0x237   :  { %2511 = vpow2.f32 %v729_v31 }
 0x238   :  { %v610_v42 = vadd.f32 %v2510_v46, %v609_v38  ;;  %2256 = vmatmul.msk.f32.vlgmr.msrb.gmra.mxu1 %vm511_vm1, %v536_v30 }
 0x239   :  { %984 = vmatpush.msrb.mxu1 %v2969_v32 }
 0x23a   :  { %v614_v43 = vsel %vm613_vm8, %v2510_v46, %v610_v42  ;;  %v3206_v42 = vld [vmem:[%s3946_s2 + $0x278] sm:$0xff] }
 0x23b   :  { %v619_v16 = vsel %vm616_vm9, %v618_v8, %v614_v43 }
 0x23c   :  { %v621_v54 = vmul.f32 %v3079_v41, %v619_v16  ;;  %v3196_v41 = vpop.f32.mrf.mxu1  ;;  %v3211_v16 = vld [vmem:[%s3946_s2 + $0x270] sm:$0xff] }
 0x23d   :  { %v2512_v55 = vpop.eup %2511  ;;  %v3186_v31 = vpop.f32.mrf.mxu3 }
 0x23e   :  { %2257 = vmatmul.msk.f32.vlgmr.msra.gmra.mxu3 %vm511_vm1, %v621_v54  ;;  %v731_v50 = vsel %vm511_vm1, %v2512_v55, 0.0  ;;  %3984 = vst [vmem:[#allocation14_spill] sm:$0xff] %v3186_v31 }
 0x23f   :  { %732 = vadd.xlane.f32.xlu1 %v731_v50  ;;  %827 = vmatpush.xpose.msra.mxu3 %v2820_v58 }
 0x245   :  { %v3188_v30 = vpop.f32.mrf.mxu3 }
 0x24d   :  { %v3190_v36 = vpop.f32.mrf.mxu3 }
 0x24e   :  { %3985 = vst [vmem:[#allocation15_spill] sm:$0xff] %v3190_v36 }
 0x255   :  { %v3192_v32 = vpop.f32.mrf.mxu3 }
 0x25d   :  { %v3194_v14 = vpop.f32.mrf.mxu3 }
 0x25e   :  { %3986 = vst [vmem:[#allocation16_spill] sm:$0xff] %v3194_v14 }
 0x265   :  { %v3198_v3 = vpop.f32.mrf.mxu3 }
 0x26d   :  { %v3201_v58 = vpop.f32.mrf.mxu3 }
 0x26e   :  { %3987 = vst [vmem:[#allocation17_spill] sm:$0xff] %v3201_v58 }
 0x2b2   :  { %v733_v10 = vpop.xlane.xlu1 %732 }
 0x2b3   :  { %2513 = vrcp.f32 %v733_v10  ;;  %v745_v57 = vand.u32 2147483648, %v733_v10  ;;  %v743_v38 = vand.u32 2147483647, %v733_v10  ;;  %vm739_vm11 = vweird.f32 %v733_v10 }
 0x2b5   :  { %v557_v40 = vpop.f32.mrf.mxu1  ;;  %v746_v8 = vor.u32 1.1754944e-38, %v745_v57  ;;  %vm744_vm13 = vcmp.eq.f32.partialorder %v743_v38, 8.507059e+37  ;;  %v3274_v57 = vld [vmem:[%s3946_s2 + $0x220] sm:$0xff]  ;;  %v3286_v38 = vld [vmem:[%s3946_s2 + $0x210] sm:$0xff] }
 0x2b6   :  { %698 = vmatmul.f32.vlgmr.msra.gmra.mxu1 %v557_v40  ;;  %v3224_v40 = vld [vmem:[%s3946_s2 + $0x260] sm:$0xff]  ;;  %3990 = vst [vmem:[#allocation20_spill] sm:$0xff] %v3274_v57 }
 0x2b7   :  { %1043 = vmatpush.xpose.msra.mxu1 %v2953_v28  ;;  %3992 = vst [vmem:[#allocation22_spill] sm:$0xff] %v3286_v38 }
 0x2b9   :  { %v2514_v44 = vpop.eup %2513 }
 0x2ba   :  { %v735_v46 = vmul.f32 %v2514_v44, %v733_v10  ;;  %vm740_vm10 = vweird.f32 %v2514_v44  ;;  %v3217_v10 = vld [vmem:[%s3946_s2 + $0x268] sm:$0xff] }
 0x2bb   :  { %vm741_vm12 = vmor %vm739_vm11, %vm740_vm10 }
 0x2bc   :  { %v736_v49 = vsub.f32 1.0, %v735_v46  ;;  %v3250_v46 = vld [vmem:[%s3946_s2 + $0x240] sm:$0xff] }
 0x2be   :  { %v737_v60 = vmul.f32 %v2514_v44, %v736_v49  ;;  %v3262_v49 = vld [vmem:[%s3946_s2 + $0x230] sm:$0xff] }
 0x2bf   :  { %3988 = vst [vmem:[#allocation18_spill] sm:$0xff] %v3262_v49 }
 0x2c0   :  { %v738_v5 = vadd.f32 %v2514_v44, %v737_v60  ;;  %v3280_v60 = vld [vmem:[%s3946_s2 + $0x218] sm:$0xff] }
 0x2c1   :  { %v642_v43 = vpop.f32.mrf.mxu3  ;;  %3991 = vst [vmem:[#allocation21_spill] sm:$0xff] %v3280_v60 }
 0x2c2   :  { %v742_v28 = vsel %vm741_vm12, %v2514_v44, %v738_v5  ;;  %678 = vmatmul.f32.vlgmr.msra.gmra.mxu0 %v642_v43  ;;  %v3238_v44 = vld [vmem:[%s3946_s2 + $0x250] sm:$0xff]  ;;  %v3292_v5 = vld [vmem:[%s3946_s2 + $0x208] sm:$0xff] }
 0x2c3   :  { %v747_v54 = vsel %vm744_vm13, %v746_v8, %v742_v28  ;;  %1006 = vmatpush.msra.mxu0 %v3206_v42  ;;  %3993 = vst [vmem:[#allocation23_spill] sm:$0xff] %v3292_v5  ;;  %v3298_v8 = vld [vmem:[%s3946_s2 + $0x200] sm:$0xff] }
 0x2c4   :  { %v749_v50 = vmul.f32 %v2512_v55, %v747_v54  ;;  %v3231_v55 = vld [vmem:[%s3946_s2 + $0x258] sm:$0xff]  ;;  %3994 = vst [vmem:[#allocation24_spill] sm:$0xff] %v3298_v8 }
 0x2c5   :  { %1007 = vmatpush.msra.mxu0 %v3211_v16 }
 0x2c6   :  { %2274 = vmatmul.msk.f32.vlgmr.msrb.gmra.mxu3 %vm511_vm1, %v749_v50 }
 0x2c7   :  { %1008 = vmatpush.msra.mxu0 %v3217_v10  ;;  %875 = vmatpush.msrb.mxu3 %v3175_v18  ;;  %v3244_v18 = vld [vmem:[%s3946_s2 + $0x248] sm:$0xff] }
 0x2c9   :  { %1009 = vmatpush.msra.mxu0 %v3224_v40 }
 0x2ca   :  { %937 = vmatmul.f32.vlgmr.msrb.gmra.mxu0 %v2809_v52  ;;  %v3256_v52 = vld [vmem:[%s3946_s2 + $0x238] sm:$0xff] }
 0x2cb   :  { %1010 = vmatpush.msra.mxu0 %v3231_v55 }
 0x2cd   :  { %1011 = vmatpush.msra.mxu0 %v3238_v44 }
 0x2ce   :  { %828 = vmatmul.f32.vlgmr.msra.gmra.mxu3 %v174_v26  ;;  %v3268_v26 = vld [vmem:[%s3946_s2 + $0x228] sm:$0xff] }
 0x2cf   :  { %1012 = vmatpush.msra.mxu0 %v3244_v18  ;;  %3989 = vst [vmem:[#allocation19_spill] sm:$0xff] %v3268_v26 }
 0x2d1   :  { %1013 = vmatpush.msra.mxu0 %v3250_v46 }
 0x2d3   :  { %1014 = vmatpush.msra.mxu0 %v3256_v52 }
 0x2d5   :  { %1015 = vmatpush.msra.mxu0 %v3262_v49 }
 0x2d7   :  { %1016 = vmatpush.msra.mxu0 %v3268_v26 }
 0x2d9   :  { %1017 = vmatpush.msra.mxu0 %v3274_v57 }
 0x2db   :  { %1018 = vmatpush.msra.mxu0 %v3280_v60 }
 0x2dd   :  { %1019 = vmatpush.msra.mxu0 %v3286_v38 }
 0x2df   :  { %1020 = vmatpush.msra.mxu0 %v3292_v5 }
 0x2e1   :  { %1021 = vmatpush.msra.mxu0 %v3298_v8 }
 0x2e3   :  { %1307 = vmatpush.msrb.mxu0 %v3198_v3 }
 0x33f   :  { %v3303_v43 = vpop.f32.mrf.mxu0 }
 0x340   :  { %3995 = vst [vmem:[#allocation25_spill] sm:$0xff] %v3303_v43 }
 0x347   :  { %v938_v28 = vpop.f32.mrf.mxu0 }
 0x348   :  { %v941_v54 = vsel %vm511_vm1, %v938_v28, -inf }
 0x349   :  { %942 = vmax.xlane.f32.xlu2 %v941_v54  ;;  %v770_v50 = vpop.f32.mrf.mxu3 }
 0x34a   :  { %806 = vmatmul.f32.vlgmr.msrb.gmra.mxu2 %v770_v50 }
 0x34b   :  { %1152 = vmatpush.xpose.msrb.mxu2 %v3192_v32 }
 0x3bc   :  { %v943_v36 = vpop.xlane.xlu2 %942 }
 0x3bd   :  { %v944_v14 = vsub.f32 %v938_v28, %v943_v36  ;;  %v3372_v28 = vld [vmem:[%s3946_s2 + $0x2a8] sm:$0xff] }
 0x3be   :  { %4005 = vst [vmem:[#allocation35_spill] sm:$0xff] %v3372_v28 }
 0x3bf   :  { %v945_v31 = vmul.f32 1.442695, %v944_v14 }
 0x3c1   :  { %2515 = vpow2.f32 %v945_v31 }
 0x3c7   :  { %v2516_v58 = vpop.eup %2515 }
 0x3c8   :  { %v947_v5 = vsel %vm511_vm1, %v2516_v58, 0.0 }
 0x3c9   :  { %948 = vadd.xlane.f32.xlu2 %v947_v5  ;;  %v3311_v5 = vld [vmem:[%s3946_s2 + $0x2f8] sm:$0xff] }
 0x43c   :  { %v949_v8 = vpop.xlane.xlu2 %948 }
 0x43d   :  { %2517 = vrcp.f32 %v949_v8  ;;  %v961_v57 = vand.u32 2147483648, %v949_v8  ;;  %v959_v54 = vand.u32 2147483647, %v949_v8  ;;  %vm955_vm15 = vweird.f32 %v949_v8 }
 0x43f   :  { %v962_v49 = vor.u32 1.1754944e-38, %v961_v57  ;;  %vm960_vm3 = vcmp.eq.f32.partialorder %v959_v54, 8.507059e+37  ;;  %v3342_v57 = vld [vmem:[%s3946_s2 + $0x2d0] sm:$0xff]  ;;  %v3378_v54 = vld [vmem:[%s3946_s2 + $0x2a0] sm:$0xff] }
 0x440   :  { %4000 = vst [vmem:[#allocation30_spill] sm:$0xff] %v3342_v57 }
 0x441   :  { %4006 = vst [vmem:[#allocation36_spill] sm:$0xff] %v3378_v54 }
 0x443   :  { %v2518_v38 = vpop.eup %2517 }
 0x444   :  { %v951_v43 = vmul.f32 %v2518_v38, %v949_v8  ;;  %vm956_vm14 = vweird.f32 %v2518_v38  ;;  %v3354_v8 = vld [vmem:[%s3946_s2 + $0x2c0] sm:$0xff] }
 0x445   :  { %vm957_vm2 = vmor %vm955_vm15, %vm956_vm14  ;;  %4002 = vst [vmem:[#allocation32_spill] sm:$0xff] %v3354_v8 }
 0x446   :  { %v952_v60 = vsub.f32 1.0, %v951_v43  ;;  %v3366_v43 = vld [vmem:[%s3946_s2 + $0x2b0] sm:$0xff] }
 0x447   :  { %4004 = vst [vmem:[#allocation34_spill] sm:$0xff] %v3366_v43 }
 0x448   :  { %v953_v26 = vmul.f32 %v2518_v38, %v952_v60  ;;  %v3317_v60 = vld [vmem:[%s3946_s2 + $0x2f0] sm:$0xff] }
 0x449   :  { %3996 = vst [vmem:[#allocation26_spill] sm:$0xff] %v3317_v60 }
 0x44a   :  { %v954_v50 = vadd.f32 %v2518_v38, %v953_v26  ;;  %v3323_v26 = vld [vmem:[%s3946_s2 + $0x2e8] sm:$0xff] }
 0x44b   :  { %3997 = vst [vmem:[#allocation27_spill] sm:$0xff] %v3323_v26 }
 0x44c   :  { %v958_v36 = vsel %vm957_vm2, %v2518_v38, %v954_v50  ;;  %v3348_v38 = vld [vmem:[%s3946_s2 + $0x2c8] sm:$0xff]  ;;  %v3384_v50 = vld [vmem:[%s3946_s2 + $0x298] sm:$0xff] }
 0x44d   :  { %v963_v31 = vsel %vm960_vm3, %v962_v49, %v958_v36  ;;  %v3335_v49 = vld [vmem:[%s3946_s2 + $0x2d8] sm:$0xff]  ;;  %4001 = vst [vmem:[#allocation31_spill] sm:$0xff] %v3348_v38  ;;  %v3390_v36 = vld [vmem:[%s3946_s2 + $0x290] sm:$0xff] }
 0x44e   :  { %v965_v14 = vmul.f32 %v2516_v58, %v963_v31  ;;  %v3329_v58 = vld [vmem:[%s3946_s2 + $0x2e0] sm:$0xff]  ;;  %3999 = vst [vmem:[#allocation29_spill] sm:$0xff] %v3335_v49  ;;  %v3396_v31 = vld [vmem:[%s3946_s2 + $0x288] sm:$0xff] }
 0x44f   :  { %3998 = vst [vmem:[#allocation28_spill] sm:$0xff] %v3329_v58 }
 0x450   :  { %2308 = vmatmul.msk.f32.vlgmr.msrb.gmra.mxu1 %vm511_vm1, %v965_v14  ;;  %4007 = vst [vmem:[#allocation37_spill] sm:$0xff] %v3384_v50  ;;  %v3402_v14 = vld [vmem:[%s3946_s2 + $0x280] sm:$0xff] }
 0x451   :  { %1113 = vmatpush.msrb.mxu1 %v3311_v5  ;;  %4008 = vst [vmem:[#allocation38_spill] sm:$0xff] %v3390_v36 }
 0x452   :  { %4009 = vst [vmem:[#allocation39_spill] sm:$0xff] %v3396_v31 }
 0x453   :  { %1114 = vmatpush.msrb.mxu1 %v3317_v60  ;;  %4010 = vst [vmem:[#allocation40_spill] sm:$0xff] %v3402_v14 }
 0x455   :  { %1115 = vmatpush.msrb.mxu1 %v3323_v26 }
 0x457   :  { %1116 = vmatpush.msrb.mxu1 %v3329_v58 }
 0x458   :  { %1044 = vmatmul.f32.vlgmr.msra.gmra.mxu1 %v2811_v53  ;;  %v3360_v53 = vld [vmem:[%s3946_s2 + $0x2b8] sm:$0xff] }
 0x459   :  { %1117 = vmatpush.msrb.mxu1 %v3335_v49  ;;  %4003 = vst [vmem:[#allocation33_spill] sm:$0xff] %v3360_v53 }
 0x45b   :  { %1118 = vmatpush.msrb.mxu1 %v3342_v57 }
 0x45d   :  { %1119 = vmatpush.msrb.mxu1 %v3348_v38 }
 0x45f   :  { %1120 = vmatpush.msrb.mxu1 %v3354_v8 }
 0x461   :  { %1121 = vmatpush.msrb.mxu1 %v3360_v53 }
 0x463   :  { %1122 = vmatpush.msrb.mxu1 %v3366_v43 }
 0x465   :  { %1123 = vmatpush.msrb.mxu1 %v3372_v28 }
 0x467   :  { %1124 = vmatpush.msrb.mxu1 %v3378_v54  ;;  %v3407_v54 = vpop.f32.mrf.mxu1 }
 0x468   :  { %4011 = vst [vmem:[#allocation41_spill] sm:$0xff] %v3407_v54 }
 0x469   :  { %1125 = vmatpush.msrb.mxu1 %v3384_v50 }
 0x46b   :  { %1126 = vmatpush.msrb.mxu1 %v3390_v36 }
 0x46d   :  { %1127 = vmatpush.msrb.mxu1 %v3396_v31 }
 0x46f   :  { %1128 = vmatpush.msrb.mxu1 %v3402_v14 }
 0x471   :  { %1417 = vmatpush.msra.mxu1 %v2977_v35 }
 0x4cd   :  { %v986_v50 = vpop.f32.mrf.mxu1 }
 0x4ce   :  { %1022 = vmatmul.f32.vlgmr.msra.gmra.mxu0 %v986_v50 }
 0x4cf   :  { %1369 = vmatpush.xpose.msra.mxu0 %v2973_v33 }
 0x4d5   :  { %v1045_v28 = vpop.f32.mrf.mxu1 }
 0x4d6   :  { %v1048_v36 = vsel %vm511_vm1, %v1045_v28, -inf }
 0x4d7   :  { %1049 = vmax.xlane.f32.xlu2 %v1048_v36 }
 0x54a   :  { %v1050_v43 = vpop.xlane.xlu2 %1049 }
 0x54b   :  { %v1051_v53 = vsub.f32 %v1045_v28, %v1050_v43  ;;  %v3416_v28 = vpop.f32.mrf.mxu2 }
 0x54d   :  { %v1052_v8 = vmul.f32 1.442695, %v1051_v53 }
 0x54f   :  { %2519 = vpow2.f32 %v1052_v8 }
 0x555   :  { %v2520_v38 = vpop.eup %2519 }
 0x556   :  { %v1054_v31 = vsel %vm511_vm1, %v2520_v38, 0.0 }
 0x557   :  { %1055 = vadd.xlane.f32.xlu0 %v1054_v31 }
 0x5ca   :  { %v1056_v14 = vpop.xlane.xlu0 %1055 }
 0x5cb   :  { %2521 = vrcp.f32 %v1056_v14  ;;  %v1068_v50 = vand.u32 2147483648, %v1056_v14  ;;  %v1066_v26 = vand.u32 2147483647, %v1056_v14  ;;  %vm1062_vm5 = vweird.f32 %v1056_v14 }
 0x5cd   :  { %v1069_v36 = vor.u32 1.1754944e-38, %v1068_v50  ;;  %vm1067_vm7 = vcmp.eq.f32.partialorder %v1066_v26, 8.507059e+37 }
 0x5d1   :  { %v2522_v57 = vpop.eup %2521 }
 0x5d2   :  { %v1058_v54 = vmul.f32 %v2522_v57, %v1056_v14  ;;  %vm1063_vm4 = vweird.f32 %v2522_v57 }
 0x5d3   :  { %vm1064_vm6 = vmor %vm1062_vm5, %vm1063_vm4 }
 0x5d4   :  { %v1059_v49 = vsub.f32 1.0, %v1058_v54 }
 0x5d6   :  { %v1060_v58 = vmul.f32 %v2522_v57, %v1059_v49 }
 0x5d8   :  { %v1061_v60 = vadd.f32 %v2522_v57, %v1060_v58 }
 0x5da   :  { %v1065_v43 = vsel %vm1064_vm6, %v2522_v57, %v1061_v60 }
 0x5db   :  { %v1070_v8 = vsel %vm1067_vm7, %v1069_v36, %v1065_v43 }
 0x5dc   :  { %v1072_v53 = vmul.f32 %v2520_v38, %v1070_v8 }
 0x5de   :  { %2325 = vmatmul.msk.f32.vlgmr.msra.gmra.mxu2 %vm511_vm1, %v1072_v53 }
 0x5df   :  { %1200 = vmatpush.msra.mxu2 %v3198_v3 }
 0x5e6   :  { %1153 = vmatmul.f32.vlgmr.msrb.gmra.mxu2 %v2912_v20 }
 0x5e7   :  { %1259 = vmatpush.xpose.msrb.mxu2 %v3192_v32 }
 0x661   :  { %v1093_v49 = vpop.f32.mrf.mxu2 }
 0x662   :  { %1129 = vmatmul.f32.vlgmr.msrb.gmra.mxu1 %v1093_v49 }
 0x663   :  { %1502 = vmatpush.msrb.mxu1 %v2977_v35 }
 0x669   :  { %v1154_v58 = vpop.f32.mrf.mxu2 }
 0x66a   :  { %v1157_v60 = vsel %vm511_vm1, %v1154_v58, -inf }
 0x66b   :  { %1158 = vmax.xlane.f32.xlu1 %v1157_v60 }
 0x6de   :  { %v1159_v26 = vpop.xlane.xlu1 %1158 }
 0x6df   :  { %v1160_v57 = vsub.f32 %v1154_v58, %v1159_v26 }
 0x6e1   :  { %v1161_v38 = vmul.f32 1.442695, %v1160_v57 }
 0x6e3   :  { %2523 = vpow2.f32 %v1161_v38 }
 0x6e9   :  { %v2524_v54 = vpop.eup %2523 }
 0x6ea   :  { %v1163_v3 = vsel %vm511_vm1, %v2524_v54, 0.0 }
 0x6eb   :  { %1164 = vadd.xlane.f32.xlu2 %v1163_v3 }
 0x75e   :  { %v1165_v20 = vpop.xlane.xlu2 %1164 }
 0x75f   :  { %2525 = vrcp.f32 %v1165_v20  ;;  %v1177_v50 = vand.u32 2147483648, %v1165_v20  ;;  %v1175_v35 = vand.u32 2147483647, %v1165_v20  ;;  %vm1171_vm9 = vweird.f32 %v1165_v20 }
 0x761   :  { %v1178_v8 = vor.u32 1.1754944e-38, %v1177_v50  ;;  %vm1176_vm11 = vcmp.eq.f32.partialorder %v1175_v35, 8.507059e+37 }
 0x765   :  { %v2526_v32 = vpop.eup %2525 }
 0x766   :  { %v1167_v31 = vmul.f32 %v2526_v32, %v1165_v20  ;;  %vm1172_vm8 = vweird.f32 %v2526_v32 }
 0x767   :  { %vm1173_vm10 = vmor %vm1171_vm9, %vm1172_vm8 }
 0x768   :  { %v1168_v14 = vsub.f32 1.0, %v1167_v31 }
 0x76a   :  { %v1169_v36 = vmul.f32 %v2526_v32, %v1168_v14 }
 0x76c   :  { %v1170_v43 = vadd.f32 %v2526_v32, %v1169_v36 }
 0x76e   :  { %v1174_v53 = vsel %vm1173_vm10, %v2526_v32, %v1170_v43 }
 0x76f   :  { %v1179_v49 = vsel %vm1176_vm11, %v1178_v8, %v1174_v53 }
 0x770   :  { %v1181_v58 = vmul.f32 %v2524_v54, %v1179_v49 }
 0x772   :  { %2342 = vmatmul.msk.f32.vlgmr.msra.gmra.mxu2 %vm511_vm1, %v1181_v58 }
 0x77a   :  { %1260 = vmatmul.f32.vlgmr.msrb.gmra.mxu2 %v3188_v30 }
 0x7f5   :  { %v3423_v60 = vpop.f32.mrf.mxu2 }
 0x7fd   :  { %v1261_v26 = vpop.f32.mrf.mxu2 }
 0x7fe   :  { %v1264_v57 = vsel %vm511_vm1, %v1261_v26, -inf }
 0x7ff   :  { %1265 = vmax.xlane.f32.xlu0 %v1264_v57  ;;  %v2375_v57 = vld [vmem:[%s3946_s2 + $0x3f8] sm:$0xff] }
 0x800   :  { %1329 = vmatpush.msra.mxu2 %v2375_v57 }
 0x872   :  { %v1266_v38 = vpop.xlane.xlu0 %1265 }
 0x873   :  { %v1267_v3 = vsub.f32 %v1261_v26, %v1266_v38  ;;  %v2374_v38 = vld [vmem:[%s3946_s2 + $0x3f0] sm:$0xff] }
 0x874   :  { %1330 = vmatpush.msra.mxu2 %v2374_v38 }
 0x875   :  { %v1268_v31 = vmul.f32 1.442695, %v1267_v3  ;;  %v2373_v3 = vld [vmem:[%s3946_s2 + $0x3e8] sm:$0xff] }
 0x876   :  { %1331 = vmatpush.msra.mxu2 %v2373_v3 }
 0x877   :  { %2527 = vpow2.f32 %v1268_v31 }
 0x87d   :  { %v2528_v20 = vpop.eup %2527 }
 0x87e   :  { %v1270_v32 = vsel %vm511_vm1, %v2528_v20, 0.0 }
 0x87f   :  { %1271 = vadd.xlane.f32.xlu1 %v1270_v32 }
 0x8f2   :  { %v1272_v14 = vpop.xlane.xlu1 %1271 }
 0x8f3   :  { %2529 = vrcp.f32 %v1272_v14  ;;  %v1284_v30 = vand.u32 2147483648, %v1272_v14  ;;  %v1282_v43 = vand.u32 2147483647, %v1272_v14  ;;  %vm1278_vm13 = vweird.f32 %v1272_v14 }
 0x8f5   :  { %v1285_v53 = vor.u32 1.1754944e-38, %v1284_v30  ;;  %vm1283_vm15 = vcmp.eq.f32.partialorder %v1282_v43, 8.507059e+37 }
 0x8f9   :  { %v2530_v54 = vpop.eup %2529 }
 0x8fa   :  { %v1274_v50 = vmul.f32 %v2530_v54, %v1272_v14  ;;  %vm1279_vm12 = vweird.f32 %v2530_v54 }
 0x8fb   :  { %vm1280_vm14 = vmor %vm1278_vm13, %vm1279_vm12 }
 0x8fc   :  { %v1275_v36 = vsub.f32 1.0, %v1274_v50 }
 0x8fe   :  { %v1276_v35 = vmul.f32 %v2530_v54, %v1275_v36 }
 0x900   :  { %v1277_v8 = vadd.f32 %v2530_v54, %v1276_v35 }
 0x902   :  { %v1281_v49 = vsel %vm1280_vm14, %v2530_v54, %v1277_v8 }
 0x903   :  { %v1286_v58 = vsel %vm1283_vm15, %v1285_v53, %v1281_v49 }
 0x904   :  { %v1288_v26 = vmul.f32 %v2528_v20, %v1286_v58 }
 0x906   :  { %2359 = vmatmul.msk.f32.vlgmr.msrb.gmra.mxu0 %vm511_vm1, %v1288_v26 }
 0x907   :  { %1454 = vmatpush.xpose.msrb.mxu0 %v2973_v33  ;;  %v2371_v33 = vld [vmem:[%s3946_s2 + $0x3d8] sm:$0xff] }
 0x90e   :  { %1370 = vmatmul.f32.vlgmr.msra.gmra.mxu0 %v2799_v47  ;;  %v2372_v47 = vld [vmem:[%s3946_s2 + $0x3e0] sm:$0xff] }
 0x90f   :  { %1543 = vmatpush.msra.mxu0 %v3018_v62  ;;  %1332 = vmatpush.msra.mxu2 %v2372_v47  ;;  %v2370_v62 = vld [vmem:[%s3946_s2 + $0x3d0] sm:$0xff] }
 0x911   :  { %1544 = vmatpush.msra.mxu0 %v3029_v1  ;;  %1333 = vmatpush.msra.mxu2 %v2371_v33  ;;  %v2369_v1 = vld [vmem:[%s3946_s2 + $0x3c8] sm:$0xff] }
 0x913   :  { %1545 = vmatpush.msra.mxu0 %v3038_v6  ;;  %1334 = vmatpush.msra.mxu2 %v2370_v62  ;;  %v2368_v6 = vld [vmem:[%s3946_s2 + $0x3c0] sm:$0xff]  ;;  %v4015_v62 = vld [vmem:[#allocation13_spill] sm:$0xff] }
 0x915   :  { %1546 = vmatpush.msra.mxu0 %v3047_v12  ;;  %1335 = vmatpush.msra.mxu2 %v2369_v1  ;;  %v2366_v12 = vld [vmem:[%s3946_s2 + $0x3b0] sm:$0xff] }
 0x916   :  { %1455 = vmatmul.f32.vlgmr.msrb.gmra.mxu0 %v2807_v51  ;;  %v2367_v51 = vld [vmem:[%s3946_s2 + $0x3b8] sm:$0xff] }
 0x917   :  { %1547 = vmatpush.msra.mxu0 %v3062_v37  ;;  %1336 = vmatpush.msra.mxu2 %v2368_v6  ;;  %v2365_v37 = vld [vmem:[%s3946_s2 + $0x3a8] sm:$0xff] }
 0x919   :  { %1548 = vmatpush.msra.mxu0 %v3071_v39  ;;  %1337 = vmatpush.msra.mxu2 %v2367_v51  ;;  %v2364_v39 = vld [vmem:[%s3946_s2 + $0x3a0] sm:$0xff] }
 0x91b   :  { %1549 = vmatpush.msra.mxu0 %v3099_v45  ;;  %1338 = vmatpush.msra.mxu2 %v2366_v12  ;;  %v2363_v45 = vld [vmem:[%s3946_s2 + $0x398] sm:$0xff] }
 0x91d   :  { %1550 = vmatpush.msra.mxu0 %v3108_v48  ;;  %1339 = vmatpush.msra.mxu2 %v2365_v37  ;;  %v2362_v48 = vld [vmem:[%s3946_s2 + $0x390] sm:$0xff] }
 0x91f   :  { %1551 = vmatpush.msra.mxu0 %v3117_v56  ;;  %1340 = vmatpush.msra.mxu2 %v2364_v39  ;;  %v2361_v56 = vld [vmem:[%s3946_s2 + $0x388] sm:$0xff]  ;;  %v4016_v39 = vld [vmem:[#allocation6_spill] sm:$0xff] }
 0x921   :  { %1552 = vmatpush.msra.mxu0 %v3126_v59  ;;  %1341 = vmatpush.msra.mxu2 %v2363_v45  ;;  %v2360_v59 = vld [vmem:[%s3946_s2 + $0x380] sm:$0xff]  ;;  %v3527_v45 = vpop.f32.mrf.mxu1 }
 0x923   :  { %1553 = vmatpush.msra.mxu0 %v3135_v61  ;;  %1342 = vmatpush.msra.mxu2 %v2362_v48  ;;  %v2567_v61 = vld [vmem:[%s3946_s2 + $0x178] sm:$0xff] }
 0x925   :  { %1554 = vmatpush.msra.mxu0 %v3143_v63  ;;  %1343 = vmatpush.msra.mxu2 %v2361_v56 }
 0x927   :  { %1555 = vmatpush.msra.mxu0 %v3150_v0  ;;  %1344 = vmatpush.msra.mxu2 %v2360_v59  ;;  %v4017_v59 = vld [vmem:[#allocation7_spill] sm:$0xff] }
 0x929   :  { %1556 = vmatpush.msra.mxu0 %v3156_v4  ;;  %1650 = vmatpush.msrb.mxu2 %v2567_v61 }
 0x92b   :  { %1557 = vmatpush.msra.mxu0 %v3162_v2  ;;  %1651 = vmatpush.msrb.mxu2 %v2856_v7  ;;  %v4012_v7 = vld [vmem:[#allocation10_spill] sm:$0xff] }
 0x92d   :  { %1558 = vmatpush.msra.mxu0 %v3170_v34  ;;  %1652 = vmatpush.msrb.mxu2 %v2865_v9  ;;  %v4013_v9 = vld [vmem:[#allocation11_spill] sm:$0xff] }
 0x92f   :  { %1795 = vmatpush.xpose.msrb.mxu0 %v2956_v29  ;;  %1653 = vmatpush.msrb.mxu2 %v2873_v11  ;;  %v3514_v11 = vpop.f32.mrf.mxu0 }
 0x931   :  { %1654 = vmatpush.msrb.mxu2 %v2882_v13 }
 0x933   :  { %1655 = vmatpush.msrb.mxu2 %v2892_v15  ;;  %v4014_v15 = vld [vmem:[#allocation12_spill] sm:$0xff] }
 0x935   :  { %1656 = vmatpush.msrb.mxu2 %v2901_v17 }
 0x937   :  { %1657 = vmatpush.msrb.mxu2 %v2910_v19 }
 0x939   :  { %1658 = vmatpush.msrb.mxu2 %v2917_v21 }
 0x93b   :  { %1659 = vmatpush.msrb.mxu2 %v2924_v22 }
 0x93d   :  { %1660 = vmatpush.msrb.mxu2 %v2930_v23 }
 0x93f   :  { %1661 = vmatpush.msrb.mxu2 %v2935_v24 }
 0x941   :  { %1662 = vmatpush.msrb.mxu2 %v2941_v25 }
 0x943   :  { %1663 = vmatpush.msrb.mxu2 %v2950_v27 }
 0x945   :  { %1664 = vmatpush.msrb.mxu2 %v4012_v7  ;;  %v4021_v7 = vld [vmem:[#allocation21_spill] sm:$0xff] }
 0x947   :  { %1665 = vmatpush.msrb.mxu2 %v4013_v9 }
 0x983   :  { %v1309_v13 = vpop.f32.mrf.mxu0 }
 0x984   :  { %1345 = vmatmul.f32.vlgmr.msra.gmra.mxu2 %v1309_v13 }
 0x985   :  { %1949 = vmatpush.msra.mxu2 %v4014_v15 }
 0x98b   :  { %v1371_v17 = vpop.f32.mrf.mxu0 }
 0x98c   :  { %v1374_v19 = vsel %vm511_vm1, %v1371_v17, -inf }
 0x98d   :  { %1375 = vmax.xlane.f32.xlu2 %v1374_v19 }
 0x993   :  { %v1456_v21 = vpop.f32.mrf.mxu0 }
 0x994   :  { %v1459_v22 = vsel %vm511_vm1, %v1456_v21, -inf }
 0x995   :  { %1460 = vmax.xlane.f32.xlu0 %v1459_v22 }
 0xa00   :  { %v1376_v23 = vpop.xlane.xlu2 %1375 }
 0xa01   :  { %v1377_v24 = vsub.f32 %v1371_v17, %v1376_v23 }
 0xa03   :  { %v1378_v25 = vmul.f32 1.442695, %v1377_v24 }
 0xa05   :  { %2531 = vpow2.f32 %v1378_v25 }
 0xa08   :  { %v1461_v27 = vpop.xlane.xlu0 %1460 }
 0xa09   :  { %v1462_v63 = vsub.f32 %v1456_v21, %v1461_v27 }
 0xa0b   :  { %v2532_v0 = vpop.eup %2531  ;;  %v1463_v4 = vmul.f32 1.442695, %v1462_v63 }
 0xa0c   :  { %v1380_v2 = vsel %vm511_vm1, %v2532_v0, 0.0 }
 0xa0d   :  { %2533 = vpow2.f32 %v1463_v4  ;;  %1381 = vadd.xlane.f32.xlu1 %v1380_v2 }
 0xa13   :  { %v2534_v34 = vpop.eup %2533 }
 0xa14   :  { %v1465_v31 = vsel %vm511_vm1, %v2534_v34, 0.0 }
 0xa15   :  { %1466 = vadd.xlane.f32.xlu2 %v1465_v31 }
 0xa80   :  { %v1382_v20 = vpop.xlane.xlu1 %1381 }
 0xa81   :  { %2535 = vrcp.f32 %v1382_v20  ;;  %v1394_v36 = vand.u32 2147483648, %v1382_v20  ;;  %v1392_v35 = vand.u32 2147483647, %v1382_v20  ;;  %vm1388_vm3 = vweird.f32 %v1382_v20 }
 0xa83   :  { %v1395_v53 = vor.u32 1.1754944e-38, %v1394_v36  ;;  %vm1393_vm5 = vcmp.eq.f32.partialorder %v1392_v35, 8.507059e+37  ;;  %v4027_v35 = vld [vmem:[#allocation16_spill] sm:$0xff] }
 0xa87   :  { %v2536_v32 = vpop.eup %2535 }
 0xa88   :  { %v1384_v14 = vmul.f32 %v2536_v32, %v1382_v20  ;;  %v1467_v54 = vpop.xlane.xlu2 %1466  ;;  %vm1389_vm2 = vweird.f32 %v2536_v32 }
 0xa89   :  { %2537 = vrcp.f32 %v1467_v54  ;;  %vm1390_vm4 = vmor %vm1388_vm3, %vm1389_vm2  ;;  %v1479_v3 = vand.u32 2147483648, %v1467_v54  ;;  %v1477_v33 = vand.u32 2147483647, %v1467_v54  ;;  %vm1473_vm7 = vweird.f32 %v1467_v54 }
 0xa8a   :  { %v1385_v50 = vsub.f32 1.0, %v1384_v14 }
 0xa8b   :  { %v1480_v6 = vor.u32 1.1754944e-38, %v1479_v3  ;;  %vm1478_vm9 = vcmp.eq.f32.partialorder %v1477_v33, 8.507059e+37 }
 0xa8c   :  { %v1386_v30 = vmul.f32 %v2536_v32, %v1385_v50 }
 0xa8e   :  { %v1387_v43 = vadd.f32 %v2536_v32, %v1386_v30 }
 0xa8f   :  { %v2538_v8 = vpop.eup %2537 }
 0xa90   :  { %v1391_v49 = vsel %vm1390_vm4, %v2536_v32, %v1387_v43  ;;  %v1469_v58 = vmul.f32 %v2538_v8, %v1467_v54  ;;  %vm1474_vm6 = vweird.f32 %v2538_v8  ;;  %v4026_v54 = vld [vmem:[#allocation14_spill] sm:$0xff] }
 0xa91   :  { %v1396_v26 = vsel %vm1393_vm5, %v1395_v53, %v1391_v49  ;;  %vm1475_vm8 = vmor %vm1473_vm7, %vm1474_vm6 }
 0xa92   :  { %v1470_v57 = vsub.f32 1.0, %v1469_v58  ;;  %v1398_v38 = vmul.f32 %v2532_v0, %v1396_v26 }
 0xa94   :  { %v1471_v47 = vmul.f32 %v2538_v8, %v1470_v57  ;;  %2376 = vmatmul.msk.f32.vlgmr.msra.gmra.mxu1 %vm511_vm1, %v1398_v38 }
 0xa95   :  { %1581 = vmatpush.xpose.msra.mxu1 %v4015_v62 }
 0xa96   :  { %v1472_v1 = vadd.f32 %v2538_v8, %v1471_v47 }
 0xa98   :  { %v1476_v51 = vsel %vm1475_vm8, %v2538_v8, %v1472_v1 }
 0xa99   :  { %v1481_v12 = vsel %vm1478_vm9, %v1480_v6, %v1476_v51 }
 0xa9a   :  { %v1483_v37 = vmul.f32 %v2534_v34, %v1481_v12 }
 0xa9c   :  { %2377 = vmatmul.msk.f32.vlgmr.msrb.gmra.mxu1 %vm511_vm1, %v1483_v37 }
 0xa9d   :  { %1629 = vmatpush.msrb.mxu1 %v3196_v41 }
 0xaa4   :  { %1582 = vmatmul.f32.vlgmr.msra.gmra.mxu1 %v4016_v39 }
 0xaa5   :  { %1687 = vmatpush.xpose.msra.mxu1 %v4015_v62 }
 0xb11   :  { %v1419_v48 = vpop.f32.mrf.mxu1 }
 0xb12   :  { %1559 = vmatmul.f32.vlgmr.msra.gmra.mxu0 %v1419_v48 }
 0xb13   :  { %1864 = vmatpush.msra.mxu0 %v3206_v42 }
 0xb15   :  { %1865 = vmatpush.msra.mxu0 %v3211_v16  ;;  %v4018_v16 = vld [vmem:[#allocation18_spill] sm:$0xff] }
 0xb17   :  { %1866 = vmatpush.msra.mxu0 %v3217_v10  ;;  %v4019_v10 = vld [vmem:[#allocation19_spill] sm:$0xff] }
 0xb19   :  { %1867 = vmatpush.msra.mxu0 %v3224_v40  ;;  %v3533_v56 = vpop.f32.mrf.mxu1  ;;  %v4020_v40 = vld [vmem:[#allocation20_spill] sm:$0xff] }
 0xb1a   :  { %1796 = vmatmul.f32.vlgmr.msrb.gmra.mxu0 %v4017_v59 }
 0xb1b   :  { %1868 = vmatpush.msra.mxu0 %v3231_v55  ;;  %v4022_v55 = vld [vmem:[#allocation22_spill] sm:$0xff] }
 0xb1d   :  { %1869 = vmatpush.msra.mxu0 %v3238_v44  ;;  %v4023_v44 = vld [vmem:[#allocation23_spill] sm:$0xff] }
 0xb1f   :  { %1870 = vmatpush.msra.mxu0 %v3244_v18  ;;  %v4024_v18 = vld [vmem:[#allocation24_spill] sm:$0xff] }
 0xb21   :  { %1871 = vmatpush.msra.mxu0 %v3250_v46  ;;  %v1583_v61 = vpop.f32.mrf.mxu1  ;;  %v4025_v46 = vld [vmem:[#allocation17_spill] sm:$0xff] }
 0xb22   :  { %v1586_v42 = vsel %vm511_vm1, %v1583_v61, -inf }
 0xb23   :  { %1872 = vmatpush.msra.mxu0 %v3256_v52  ;;  %1587 = vmax.xlane.f32.xlu0 %v1586_v42 }
 0xb25   :  { %1873 = vmatpush.msra.mxu0 %v4018_v16 }
 0xb27   :  { %1874 = vmatpush.msra.mxu0 %v4019_v10 }
 0xb29   :  { %1875 = vmatpush.msra.mxu0 %v4020_v40 }
 0xb2b   :  { %1876 = vmatpush.msra.mxu0 %v4021_v7 }
 0xb2d   :  { %1877 = vmatpush.msra.mxu0 %v4022_v55 }
 0xb2f   :  { %1878 = vmatpush.msra.mxu0 %v4023_v44 }
 0xb31   :  { %1879 = vmatpush.msra.mxu0 %v4024_v18 }
 0xb33   :  { %2163 = vmatpush.msrb.mxu0 %v4025_v46 }
 0xb8f   :  { %v3550_v9 = vpop.f32.mrf.mxu0 }
 0xb96   :  { %v1588_v52 = vpop.xlane.xlu0 %1587 }
 0xb97   :  { %v1589_v13 = vsub.f32 %v1583_v61, %v1588_v52  ;;  %v1797_v17 = vpop.f32.mrf.mxu0 }
 0xb98   :  { %v1800_v19 = vsel %vm511_vm1, %v1797_v17, -inf }
 0xb99   :  { %v1590_v21 = vmul.f32 1.442695, %v1589_v13  ;;  %1801 = vmax.xlane.f32.xlu0 %v1800_v19  ;;  %v4028_v19 = vld [vmem:[#allocation26_spill] sm:$0xff] }
 0xb9b   :  { %2539 = vpow2.f32 %v1590_v21  ;;  %v4029_v21 = vld [vmem:[#allocation27_spill] sm:$0xff] }
 0xba1   :  { %v2540_v22 = vpop.eup %2539 }
 0xba2   :  { %v1592_v23 = vsel %vm511_vm1, %v2540_v22, 0.0 }
 0xba3   :  { %1593 = vadd.xlane.f32.xlu1 %v1592_v23  ;;  %v4031_v23 = vld [vmem:[#allocation8_spill] sm:$0xff] }
 0xc0c   :  { %v1802_v50 = vpop.xlane.xlu0 %1801 }
 0xc0d   :  { %v1803_v36 = vsub.f32 %v1797_v17, %v1802_v50 }
 0xc0f   :  { %v1804_v43 = vmul.f32 1.442695, %v1803_v36 }
 0xc16   :  { %v1594_v24 = vpop.xlane.xlu1 %1593 }
 0xc17   :  { %2541 = vrcp.f32 %v1594_v24  ;;  %v1606_v0 = vand.u32 2147483648, %v1594_v24  ;;  %v1604_v2 = vand.u32 2147483647, %v1594_v24  ;;  %vm1600_vm11 = vweird.f32 %v1594_v24 }
 0xc18   :  { %2543 = vpow2.f32 %v1804_v43 }
 0xc19   :  { %v1607_v31 = vor.u32 1.1754944e-38, %v1606_v0  ;;  %vm1605_vm13 = vcmp.eq.f32.partialorder %v1604_v2, 8.507059e+37  ;;  %v4037_v0 = vld [vmem:[#allocation34_spill] sm:$0xff]  ;;  %v4040_v2 = vld [vmem:[#allocation37_spill] sm:$0xff] }
 0xc1d   :  { %v2542_v25 = vpop.eup %2541 }
 0xc1e   :  { %v1596_v27 = vmul.f32 %v2542_v25, %v1594_v24  ;;  %vm1601_vm10 = vweird.f32 %v2542_v25  ;;  %v2544_v49 = vpop.eup %2543  ;;  %v4032_v24 = vld [vmem:[#allocation29_spill] sm:$0xff] }
 0xc1f   :  { %vm1602_vm12 = vmor %vm1600_vm11, %vm1601_vm10  ;;  %v1806_v58 = vsel %vm511_vm1, %v2544_v49, 0.0 }
 0xc20   :  { %v1597_v63 = vsub.f32 1.0, %v1596_v27  ;;  %v4035_v27 = vld [vmem:[#allocation32_spill] sm:$0xff] }
 0xc22   :  { %v1598_v4 = vmul.f32 %v2542_v25, %v1597_v63  ;;  %v4036_v63 = vld [vmem:[#allocation33_spill] sm:$0xff] }
 0xc24   :  { %v1599_v34 = vadd.f32 %v2542_v25, %v1598_v4  ;;  %v4039_v4 = vld [vmem:[#allocation36_spill] sm:$0xff] }
 0xc26   :  { %v1603_v20 = vsel %vm1602_vm12, %v2542_v25, %v1599_v34  ;;  %v4033_v25 = vld [vmem:[#allocation30_spill] sm:$0xff] }
 0xc27   :  { %v1608_v32 = vsel %vm1605_vm13, %v1607_v31, %v1603_v20  ;;  %v4041_v34 = vld [vmem:[#allocation38_spill] sm:$0xff]  ;;  %v4042_v31 = vld [vmem:[#allocation39_spill] sm:$0xff]  ;;  %v4043_v20 = vld [vmem:[#allocation40_spill] sm:$0xff] }
 0xc28   :  { %v1610_v14 = vmul.f32 %v2540_v22, %v1608_v32  ;;  %v4030_v22 = vld [vmem:[#allocation28_spill] sm:$0xff] }
 0xc2a   :  { %2394 = vmatmul.msk.f32.vlgmr.msrb.gmra.mxu1 %vm511_vm1, %v1610_v14 }
 0xc2b   :  { %1735 = vmatpush.msrb.mxu1 %v3196_v41 }
 0xc32   :  { %1688 = vmatmul.f32.vlgmr.msra.gmra.mxu1 %v4026_v54 }
 0xc33   :  { %1843 = vmatpush.msra.mxu1 %v4014_v15 }
 0xca7   :  { %v1631_v30 = vpop.f32.mrf.mxu1 }
 0xca8   :  { %1666 = vmatmul.f32.vlgmr.msrb.gmra.mxu2 %v1631_v30 }
 0xca9   :  { %2009 = vmatpush.xpose.msrb.mxu2 %v4027_v35 }
 0xcaf   :  { %v1689_v8 = vpop.f32.mrf.mxu1 }
 0xcb0   :  { %v1692_v53 = vsel %vm511_vm1, %v1689_v8, -inf }
 0xcb1   :  { %1693 = vmax.xlane.f32.xlu2 %v1692_v53 }
 0xcb9   :  { %1807 = vadd.xlane.f32.xlu2 %v1806_v58 }
 0xd24   :  { %v1694_v41 = vpop.xlane.xlu2 %1693 }
 0xd25   :  { %v1695_v26 = vsub.f32 %v1689_v8, %v1694_v41 }
 0xd27   :  { %v1696_v57 = vmul.f32 1.442695, %v1695_v26 }
 0xd29   :  { %2545 = vpow2.f32 %v1696_v57 }
 0xd2c   :  { %v1808_v3 = vpop.xlane.xlu2 %1807 }
 0xd2d   :  { %2547 = vrcp.f32 %v1808_v3  ;;  %v1820_v40 = vand.u32 2147483648, %v1808_v3  ;;  %vm1814_vm5 = vweird.f32 %v1808_v3  ;;  %v1818_v55 = vand.u32 2147483647, %v1808_v3 }
 0xd2f   :  { %v2546_v15 = vpop.eup %2545  ;;  %v1821_v52 = vor.u32 1.1754944e-38, %v1820_v40  ;;  %vm1819_vm7 = vcmp.eq.f32.partialorder %v1818_v55, 8.507059e+37  ;;  %v3611_v55 = vld [vmem:[%s3946_s2 + $0x1e8] sm:$0xff] }
 0xd30   :  { %v1698_v38 = vsel %vm511_vm1, %v2546_v15, 0.0 }
 0xd31   :  { %1699 = vadd.xlane.f32.xlu1 %v1698_v38 }
 0xd33   :  { %v2548_v33 = vpop.eup %2547 }
 0xd34   :  { %v1810_v62 = vmul.f32 %v2548_v33, %v1808_v3  ;;  %vm1815_vm3 = vweird.f32 %v2548_v33 }
 0xd35   :  { %vm1816_vm6 = vmor %vm1814_vm5, %vm1815_vm3 }
 0xd36   :  { %v1811_v6 = vsub.f32 1.0, %v1810_v62 }
 0xd38   :  { %v1812_v39 = vmul.f32 %v2548_v33, %v1811_v6 }
 0xd3a   :  { %v1813_v16 = vadd.f32 %v2548_v33, %v1812_v39 }
 0xd3c   :  { %v1817_v18 = vsel %vm1816_vm6, %v2548_v33, %v1813_v16 }
 0xd3d   :  { %v1822_v13 = vsel %vm1819_vm7, %v1821_v52, %v1817_v18  ;;  %v3617_v18 = vld [vmem:[%s3946_s2 + $0x1e0] sm:$0xff] }
 0xd3e   :  { %v1824_v17 = vmul.f32 %v2544_v49, %v1822_v13  ;;  %v829_v49 = vpop.f32.mrf.mxu3  ;;  %v3623_v13 = vld [vmem:[%s3946_s2 + $0x1d8] sm:$0xff] }
 0xd3f   :  { %v832_v58 = vsel %vm511_vm1, %v829_v49, -inf }
 0xda4   :  { %v1700_v47 = vpop.xlane.xlu1 %1699 }
 0xda5   :  { %2549 = vrcp.f32 %v1700_v47  ;;  %v1712_v37 = vand.u32 2147483648, %v1700_v47  ;;  %v1710_v59 = vand.u32 2147483647, %v1700_v47  ;;  %vm1706_vm15 = vweird.f32 %v1700_v47 }
 0xda7   :  { %v1713_v42 = vor.u32 1.1754944e-38, %v1712_v37  ;;  %vm1711_vm4 = vcmp.eq.f32.partialorder %v1710_v59, 8.507059e+37  ;;  %v3591_v37 = vpop.f32.mrf.mxu2 }
 0xdab   :  { %v2550_v1 = vpop.eup %2549 }
 0xdac   :  { %v1702_v51 = vmul.f32 %v2550_v1, %v1700_v47  ;;  %vm1707_vm14 = vweird.f32 %v2550_v1 }
 0xdad   :  { %vm1708_vm2 = vmor %vm1706_vm15, %vm1707_vm14 }
 0xdae   :  { %v1703_v12 = vsub.f32 1.0, %v1702_v51 }
 0xdaf   :  { %v3593_v39 = vpop.f32.mrf.mxu2 }
 0xdb0   :  { %v1704_v48 = vmul.f32 %v2550_v1, %v1703_v12  ;;  %v4044_v12 = vld [vmem:[#allocation9_spill] sm:$0xff] }
 0xdb2   :  { %v1705_v61 = vadd.f32 %v2550_v1, %v1704_v48 }
 0xdb4   :  { %v1709_v10 = vsel %vm1708_vm2, %v2550_v1, %v1705_v61 }
 0xdb5   :  { %v1714_v7 = vsel %vm1711_vm4, %v1713_v42, %v1709_v10 }
 0xdb6   :  { %v1716_v44 = vmul.f32 %v2546_v15, %v1714_v7  ;;  %v3605_v7 = vld [vmem:[%s3946_s2 + $0x1f0] sm:$0xff] }
 0xdb8   :  { %2411 = vmatmul.msk.f32.vlgmr.msrb.gmra.mxu1 %vm511_vm1, %v1716_v44 }
 0xdb9   :  { %1901 = vmatpush.xpose.msrb.mxu1 %v2956_v29  ;;  %v4034_v29 = vld [vmem:[#allocation31_spill] sm:$0xff] }
 0xdc0   :  { %2428 = vmatmul.msk.f32.vlgmr.msra.gmra.mxu1 %vm511_vm1, %v1824_v17 }
 0xdc1   :  { %1970 = vmatpush.msra.mxu1 %v3311_v5  ;;  %v4038_v5 = vld [vmem:[#allocation35_spill] sm:$0xff] }
 0xdc3   :  { %1971 = vmatpush.msra.mxu1 %v4028_v19  ;;  %v3629_v19 = vld [vmem:[%s3946_s2 + $0x1d0] sm:$0xff] }
 0xdc5   :  { %1972 = vmatpush.msra.mxu1 %v4029_v21  ;;  %v3635_v21 = vld [vmem:[%s3946_s2 + $0x1c8] sm:$0xff] }
 0xdc7   :  { %1973 = vmatpush.msra.mxu1 %v4030_v22 }
 0xdc8   :  { %1902 = vmatmul.f32.vlgmr.msrb.gmra.mxu1 %v4031_v23  ;;  %v3641_v23 = vld [vmem:[%s3946_s2 + $0x1c0] sm:$0xff] }
 0xdc9   :  { %1974 = vmatpush.msra.mxu1 %v4032_v24  ;;  %v3647_v24 = vld [vmem:[%s3946_s2 + $0x1b8] sm:$0xff] }
 0xdcb   :  { %1975 = vmatpush.msra.mxu1 %v4033_v25 }
 0xdcd   :  { %1976 = vmatpush.msra.mxu1 %v4034_v29 }
 0xdcf   :  { %1977 = vmatpush.msra.mxu1 %v4035_v27  ;;  %v3657_v27 = vld [vmem:[%s3946_s2 + $0x1b0] sm:$0xff] }
 0xdd1   :  { %1978 = vmatpush.msra.mxu1 %v4036_v63  ;;  %v3663_v63 = vld [vmem:[%s3946_s2 + $0x1a8] sm:$0xff] }
 0xdd3   :  { %1979 = vmatpush.msra.mxu1 %v4037_v0 }
 0xdd5   :  { %1980 = vmatpush.msra.mxu1 %v4038_v5 }
 0xdd7   :  { %1981 = vmatpush.msra.mxu1 %v4039_v4  ;;  %v3669_v4 = vld [vmem:[%s3946_s2 + $0x1a0] sm:$0xff] }
 0xdd9   :  { %1982 = vmatpush.msra.mxu1 %v4040_v2 }
 0xddb   :  { %1983 = vmatpush.msra.mxu1 %v4041_v34  ;;  %v3675_v34 = vld [vmem:[%s3946_s2 + $0x198] sm:$0xff] }
 0xddd   :  { %1984 = vmatpush.msra.mxu1 %v4042_v31 }
 0xddf   :  { %1985 = vmatpush.msra.mxu1 %v4043_v20 }
 0xe35   :  { %v3582_v32 = vpop.f32.mrf.mxu1 }
 0xe3d   :  { %v1845_v14 = vpop.f32.mrf.mxu1 }
 0xe3e   :  { %1880 = vmatmul.f32.vlgmr.msra.gmra.mxu0 %v1845_v14 }
 0xe45   :  { %v1903_v54 = vpop.f32.mrf.mxu1 }
 0xe46   :  { %v1906_v50 = vsel %vm511_vm1, %v1903_v54, -inf }
 0xe47   :  { %1907 = vmax.xlane.f32.xlu0 %v1906_v50 }
 0xeba   :  { %v1908_v36 = vpop.xlane.xlu0 %1907 }
 0xebb   :  { %v1909_v30 = vsub.f32 %v1903_v54, %v1908_v36  ;;  %v3681_v54 = vld [vmem:[%s3946_s2 + $0x190] sm:$0xff]  ;;  %v3687_v36 = vld [vmem:[%s3946_s2 + $0x188] sm:$0xff] }
 0xebd   :  { %v1910_v43 = vmul.f32 1.442695, %v1909_v30 }
 0xebf   :  { %2551 = vpow2.f32 %v1910_v43 }
 0xec5   :  { %v2552_v8 = vpop.eup %2551 }
 0xec6   :  { %v1912_v53 = vsel %vm511_vm1, %v2552_v8, 0.0 }
 0xec7   :  { %1913 = vadd.xlane.f32.xlu1 %v1912_v53 }
 0xecf   :  { %833 = vmax.xlane.f32.xlu1 %v832_v58  ;;  %v3701_v58 = vld [vmem:[%s3946_s2 + $0x378] sm:$0xff] }
 0xf3a   :  { %v1914_v41 = vpop.xlane.xlu1 %1913 }
 0xf3b   :  { %2553 = vrcp.f32 %v1914_v41  ;;  %v1926_v38 = vand.u32 2147483648, %v1914_v41  ;;  %v1924_v47 = vand.u32 2147483647, %v1914_v41  ;;  %vm1920_vm9 = vweird.f32 %v1914_v41 }
 0xf3d   :  { %v1927_v62 = vor.u32 1.1754944e-38, %v1926_v38  ;;  %vm1925_vm11 = vcmp.eq.f32.partialorder %v1924_v47, 8.507059e+37  ;;  %v3731_v38 = vld [vmem:[%s3946_s2 + $0x350] sm:$0xff]  ;;  %v3743_v47 = vld [vmem:[%s3946_s2 + $0x340] sm:$0xff] }
 0xf41   :  { %v2554_v26 = vpop.eup %2553 }
 0xf42   :  { %v1916_v57 = vmul.f32 %v2554_v26, %v1914_v41  ;;  %vm1921_vm8 = vweird.f32 %v2554_v26  ;;  %v834_v48 = vpop.xlane.xlu1 %833  ;;  %v3707_v41 = vld [vmem:[%s3946_s2 + $0x370] sm:$0xff] }
 0xf43   :  { %vm1922_vm10 = vmor %vm1920_vm9, %vm1921_vm8  ;;  %v835_v59 = vsub.f32 %v829_v49, %v834_v48  ;;  %v3785_v48 = vld [vmem:[%s3946_s2 + $0x308] sm:$0xff] }
 0xf44   :  { %v1917_v15 = vsub.f32 1.0, %v1916_v57  ;;  %v3719_v57 = vld [vmem:[%s3946_s2 + $0x360] sm:$0xff] }
 0xf45   :  { %v836_v42 = vmul.f32 1.442695, %v835_v59  ;;  %v3791_v59 = vld [vmem:[%s3946_s2 + $0x300] sm:$0xff] }
 0xf46   :  { %v1918_v3 = vmul.f32 %v2554_v26, %v1917_v15  ;;  %v3725_v15 = vld [vmem:[%s3946_s2 + $0x358] sm:$0xff] }
 0xf47   :  { %2555 = vpow2.f32 %v836_v42 }
 0xf48   :  { %v1919_v33 = vadd.f32 %v2554_v26, %v1918_v3  ;;  %v3737_v3 = vld [vmem:[%s3946_s2 + $0x348] sm:$0xff] }
 0xf4a   :  { %v1923_v1 = vsel %vm1922_vm10, %v2554_v26, %v1919_v33  ;;  %v3713_v26 = vld [vmem:[%s3946_s2 + $0x368] sm:$0xff]  ;;  %v3749_v33 = vld [vmem:[%s3946_s2 + $0x338] sm:$0xff] }
 0xf4b   :  { %v1928_v6 = vsel %vm1925_vm11, %v1927_v62, %v1923_v1  ;;  %v3754_v62 = vld [vmem:[%s3946_s2 + $0x330] sm:$0xff]  ;;  %v3761_v1 = vld [vmem:[%s3946_s2 + $0x328] sm:$0xff] }
 0xf4c   :  { %v1930_v51 = vmul.f32 %v2552_v8, %v1928_v6  ;;  %v3693_v8 = vld [vmem:[%s3946_s2 + $0x180] sm:$0xff] }
 0xf4d   :  { %v2556_v40 = vpop.eup %2555  ;;  %v3766_v6 = vld [vmem:[%s3946_s2 + $0x320] sm:$0xff] }
 0xf4e   :  { %2445 = vmatmul.msk.f32.vlgmr.msra.gmra.mxu2 %vm511_vm1, %v1930_v51  ;;  %v3772_v51 = vld [vmem:[%s3946_s2 + $0x318] sm:$0xff] }
 0xf4f   :  { %2057 = vmatpush.msra.mxu2 %v4025_v46  ;;  %v838_v46 = vsel %vm511_vm1, %v2556_v40, 0.0 }
 0xf56   :  { %2010 = vmatmul.f32.vlgmr.msrb.gmra.mxu2 %v4044_v12  ;;  %v3778_v12 = vld [vmem:[%s3946_s2 + $0x310] sm:$0xff] }
 0xf57   :  { %2115 = vmatpush.xpose.msrb.mxu2 %v4027_v35  ;;  %v3600_v35 = vld [vmem:[%s3946_s2 + $0x1f8] sm:$0xff] }
 0xf58   :  { %897 = vmatpush.msra.mxu3 %v3600_v35 }
 0xf5a   :  { %898 = vmatpush.msra.mxu3 %v3605_v7 }
 0xf5c   :  { %899 = vmatpush.msra.mxu3 %v3611_v55 }
 0xf5e   :  { %900 = vmatpush.msra.mxu3 %v3617_v18 }
 0xf60   :  { %901 = vmatpush.msra.mxu3 %v3623_v13 }
 0xf62   :  { %902 = vmatpush.msra.mxu3 %v3629_v19 }
 0xf64   :  { %903 = vmatpush.msra.mxu3 %v3635_v21 }
 0xf66   :  { %904 = vmatpush.msra.mxu3 %v3641_v23 }
 0xf68   :  { %905 = vmatpush.msra.mxu3 %v3647_v24 }
 0xf6a   :  { %906 = vmatpush.msra.mxu3 %v3657_v27 }
 0xf6c   :  { %907 = vmatpush.msra.mxu3 %v3663_v63 }
 0xf6e   :  { %908 = vmatpush.msra.mxu3 %v3669_v4 }
 0xf70   :  { %909 = vmatpush.msra.mxu3 %v3675_v34 }
 0xf72   :  { %910 = vmatpush.msra.mxu3 %v3681_v54 }
 0xf74   :  { %911 = vmatpush.msra.mxu3 %v3687_v36 }
 0xf76   :  { %912 = vmatpush.msra.mxu3 %v3693_v8 }
 0xfd1   :  { %v1951_v61 = vpop.f32.mrf.mxu2 }
 0xfd2   :  { %1986 = vmatmul.f32.vlgmr.msra.gmra.mxu1 %v1951_v61 }
 0xfd9   :  { %v2011_v16 = vpop.f32.mrf.mxu2 }
 0xfda   :  { %v2014_v10 = vsel %vm511_vm1, %v2011_v16, -inf }
 0xfdb   :  { %2015 = vmax.xlane.f32.xlu2 %v2014_v10 }
 0xfe3   :  { %839 = vadd.xlane.f32.xlu2 %v838_v46 }
0x104e   :  { %v2016_v44 = vpop.xlane.xlu2 %2015 }
0x104f   :  { %v2017_v52 = vsub.f32 %v2011_v16, %v2016_v44 }
0x1051   :  { %v2018_v17 = vmul.f32 1.442695, %v2017_v52 }
0x1053   :  { %2557 = vpow2.f32 %v2018_v17 }
0x1056   :  { %v840_v22 = vpop.xlane.xlu2 %839 }
0x1057   :  { %2559 = vrcp.f32 %v840_v22  ;;  %v852_v31 = vand.u32 2147483648, %v840_v22  ;;  %v850_v14 = vand.u32 2147483647, %v840_v22  ;;  %vm846_vm13 = vweird.f32 %v840_v22 }
0x1059   :  { %v3649_v25 = vpop.eup %2557  ;;  %v853_v30 = vor.u32 1.1754944e-38, %v852_v31  ;;  %vm851_vm15 = vcmp.eq.f32.partialorder %v850_v14, 8.507059e+37  ;;  %v2391_v14 = vld [vmem:[%s3946_s2 + $0xe8] sm:$0xff] }
0x105a   :  { %v2020_v29 = vsel %vm511_vm1, %v3649_v25, 0.0 }
0x105b   :  { %2021 = vadd.xlane.f32.xlu0 %v2020_v29 }
0x105d   :  { %v2560_v0 = vpop.eup %2559 }
0x105e   :  { %v842_v5 = vmul.f32 %v2560_v0, %v840_v22  ;;  %vm847_vm12 = vweird.f32 %v2560_v0 }
0x105f   :  { %vm848_vm14 = vmor %vm846_vm13, %vm847_vm12 }
0x1060   :  { %v843_v2 = vsub.f32 1.0, %v842_v5  ;;  %v4045_v5 = vld [vmem:[#allocation15_spill] sm:$0xff] }
0x1062   :  { %v844_v20 = vmul.f32 %v2560_v0, %v843_v2  ;;  %v2393_v2 = vld [vmem:[%s3946_s2 + $0xf8] sm:$0xff] }
0x1064   :  { %v845_v50 = vadd.f32 %v2560_v0, %v844_v20  ;;  %v2392_v20 = vld [vmem:[%s3946_s2 + $0xf0] sm:$0xff] }
0x1066   :  { %v849_v43 = vsel %vm848_vm14, %v2560_v0, %v845_v50  ;;  %v2389_v50 = vld [vmem:[%s3946_s2 + $0xd8] sm:$0xff] }
0x1067   :  { %v854_v53 = vsel %vm851_vm15, %v853_v30, %v849_v43  ;;  %v2388_v30 = vld [vmem:[%s3946_s2 + $0xd0] sm:$0xff]  ;;  %v2387_v43 = vld [vmem:[%s3946_s2 + $0xc8] sm:$0xff] }
0x1068   :  { %v856_v49 = vmul.f32 %v2556_v40, %v854_v53  ;;  %v2386_v53 = vld [vmem:[%s3946_s2 + $0xc0] sm:$0xff] }
0x106a   :  { %2291 = vmatmul.msk.f32.vlgmr.msrb.gmra.mxu3 %vm511_vm1, %v856_v49  ;;  %v2385_v49 = vld [vmem:[%s3946_s2 + $0xb8] sm:$0xff] }
0x106b   :  { %1222 = vmatpush.msrb.mxu3 %v3701_v58 }
0x106d   :  { %1223 = vmatpush.msrb.mxu3 %v3707_v41 }
0x106f   :  { %1224 = vmatpush.msrb.mxu3 %v3713_v26 }
0x1071   :  { %1225 = vmatpush.msrb.mxu3 %v3719_v57 }
0x1073   :  { %1226 = vmatpush.msrb.mxu3 %v3725_v15 }
0x1075   :  { %1227 = vmatpush.msrb.mxu3 %v3731_v38 }
0x1077   :  { %1228 = vmatpush.msrb.mxu3 %v3737_v3 }
0x1079   :  { %1229 = vmatpush.msrb.mxu3 %v3743_v47 }
0x107b   :  { %1230 = vmatpush.msrb.mxu3 %v3749_v33 }
0x107d   :  { %1231 = vmatpush.msrb.mxu3 %v3754_v62 }
0x107f   :  { %1232 = vmatpush.msrb.mxu3 %v3761_v1 }
0x1081   :  { %1233 = vmatpush.msrb.mxu3 %v3766_v6 }
0x1083   :  { %1234 = vmatpush.msrb.mxu3 %v3772_v51 }
0x1085   :  { %1235 = vmatpush.msrb.mxu3 %v3778_v12 }
0x1087   :  { %1236 = vmatpush.msrb.mxu3 %v3785_v48 }
0x1089   :  { %1237 = vmatpush.msrb.mxu3 %v3791_v59 }
0x10ce   :  { %v2022_v61 = vpop.xlane.xlu0 %2021 }
0x10cf   :  { %2561 = vrcp.f32 %v2022_v61  ;;  %v2034_v40 = vand.u32 2147483648, %v2022_v61  ;;  %v2032_v44 = vand.u32 2147483647, %v2022_v61  ;;  %vm2028_vm3 = vweird.f32 %v2022_v61 }
0x10d1   :  { %v2035_v17 = vor.u32 1.1754944e-38, %v2034_v40  ;;  %vm2033_vm5 = vcmp.eq.f32.partialorder %v2032_v44, 8.507059e+37  ;;  %v2379_v40 = vld [vmem:[%s3946_s2 + $0x88] sm:$0xff] }
0x10d5   :  { %v2562_v42 = vpop.eup %2561 }
0x10d6   :  { %v2024_v16 = vmul.f32 %v2562_v42, %v2022_v61  ;;  %vm2029_vm2 = vweird.f32 %v2562_v42  ;;  %v2383_v61 = vld [vmem:[%s3946_s2 + $0xa8] sm:$0xff] }
0x10d7   :  { %vm2030_vm4 = vmor %vm2028_vm3, %vm2029_vm2 }
0x10d8   :  { %v2025_v10 = vsub.f32 1.0, %v2024_v16  ;;  %v2381_v16 = vld [vmem:[%s3946_s2 + $0x98] sm:$0xff] }
0x10da   :  { %v2026_v46 = vmul.f32 %v2562_v42, %v2025_v10  ;;  %v2380_v10 = vld [vmem:[%s3946_s2 + $0x90] sm:$0xff] }
0x10dc   :  { %v2027_v52 = vadd.f32 %v2562_v42, %v2026_v46  ;;  %v2378_v46 = vld [vmem:[%s3946_s2 + $0x80] sm:$0xff] }
0x10de   :  { %v2031_v22 = vsel %vm2030_vm4, %v2562_v42, %v2027_v52  ;;  %v2382_v42 = vld [vmem:[%s3946_s2 + $0xa0] sm:$0xff]  ;;  %v2482_v52 = vld [vmem:[%s3946_s2 + $0x390] sm:$0xff] }
0x10df   :  { %v2036_v29 = vsel %vm2033_vm5, %v2035_v17, %v2031_v22  ;;  %v2481_v22 = vld [vmem:[%s3946_s2 + $0x388] sm:$0xff] }
0x10e0   :  { %v2038_v0 = vmul.f32 %v3649_v25, %v2036_v29  ;;  %v2390_v25 = vld [vmem:[%s3946_s2 + $0xe0] sm:$0xff] }
0x10e2   :  { %2462 = vmatmul.msk.f32.vlgmr.msra.gmra.mxu2 %vm511_vm1, %v2038_v0 }
0x10ea   :  { %2116 = vmatmul.f32.vlgmr.msrb.gmra.mxu2 %v4045_v5 }
0x10ed   :  { %v877_v31 = vpop.f32.mrf.mxu3 }
0x10ee   :  { %913 = vmatmul.f32.vlgmr.msra.gmra.mxu3 %v877_v31  ;;  %v2480_v31 = vld [vmem:[%s3946_s2 + $0x380] sm:$0xff] }
0x10ef   :  { %1523 = vmatpush.msra.mxu3 %v2393_v2 }
0x10f1   :  { %1524 = vmatpush.msra.mxu3 %v2392_v20  ;;  %v1881_v20 = vpop.f32.mrf.mxu0 }
0x10f3   :  { %1525 = vmatpush.msra.mxu3 %v2391_v14 }
0x10f5   :  { %1526 = vmatpush.msra.mxu3 %v2390_v25 }
0x10f6   :  { %1238 = vmatmul.f32.vlgmr.msrb.gmra.mxu3 %v3423_v60  ;;  %v2384_v60 = vld [vmem:[%s3946_s2 + $0xb0] sm:$0xff] }
0x10f7   :  { %1527 = vmatpush.msra.mxu3 %v2389_v50 }
0x10f9   :  { %1528 = vmatpush.msra.mxu3 %v2388_v30 }
0x10fb   :  { %1529 = vmatpush.msra.mxu3 %v2387_v43 }
0x10fd   :  { %1530 = vmatpush.msra.mxu3 %v2386_v53 }
0x10ff   :  { %1531 = vmatpush.msra.mxu3 %v2385_v49 }
0x1101   :  { %1532 = vmatpush.msra.mxu3 %v2384_v60  ;;  %v1987_v60 = vpop.f32.mrf.mxu1 }
0x1103   :  { %1533 = vmatpush.msra.mxu3 %v2383_v61 }
0x1105   :  { %1534 = vmatpush.msra.mxu3 %v2382_v42 }
0x1107   :  { %1535 = vmatpush.msra.mxu3 %v2381_v16 }
0x1109   :  { %1536 = vmatpush.msra.mxu3 %v2380_v10 }
0x110b   :  { %1537 = vmatpush.msra.mxu3 %v2379_v40 }
0x110d   :  { %1538 = vmatpush.msra.mxu3 %v2378_v46 }
0x110e   :  { %1539 = vmatmul.f32.vlgmr.msra.gmra.mxu3 %v3533_v56 }
0x110f   :  { %1756 = vmatpush.msrb.mxu3 %v3600_v35  ;;  %v4046_v35 = vld [vmem:[#allocation25_spill] sm:$0xff] }
0x1111   :  { %1757 = vmatpush.msrb.mxu3 %v3605_v7  ;;  %v4047_v7 = vld [vmem:[#allocation41_spill] sm:$0xff] }
0x1113   :  { %1758 = vmatpush.msrb.mxu3 %v3611_v55  ;;  %v700_v55 = vadd.f32 %v4047_v7, %v4046_v35 }
0x1115   :  { %1759 = vmatpush.msrb.mxu3 %v3617_v18 }
0x1117   :  { %1760 = vmatpush.msrb.mxu3 %v3623_v13  ;;  %v810_v13 = vadd.f32 %v3416_v28, %v700_v55  ;;  %v2495_v28 = vld [vmem:[%s3946_s2 + $0x3f8] sm:$0xff] }
0x1118   :  { %2184 = vmatpush.msra.mxu2 %v2495_v28 }
0x1119   :  { %1761 = vmatpush.msrb.mxu3 %v3629_v19 }
0x111b   :  { %1762 = vmatpush.msrb.mxu3 %v3635_v21 }
0x111d   :  { %1763 = vmatpush.msrb.mxu3 %v3641_v23 }
0x111f   :  { %1764 = vmatpush.msrb.mxu3 %v3647_v24 }
0x1121   :  { %1765 = vmatpush.msrb.mxu3 %v3657_v27 }
0x1123   :  { %1766 = vmatpush.msrb.mxu3 %v3663_v63 }
0x1125   :  { %1767 = vmatpush.msrb.mxu3 %v3669_v4 }
0x1127   :  { %1768 = vmatpush.msrb.mxu3 %v3675_v34 }
0x1129   :  { %1769 = vmatpush.msrb.mxu3 %v3681_v54 }
0x112b   :  { %1770 = vmatpush.msrb.mxu3 %v3687_v36 }
0x112d   :  { %1771 = vmatpush.msrb.mxu3 %v3693_v8 }
0x112e   :  { %1772 = vmatmul.f32.vlgmr.msrb.gmra.mxu3 %v3582_v32 }
0x112f   :  { %2078 = vmatpush.msra.mxu3 %v3701_v58 }
0x1131   :  { %2079 = vmatpush.msra.mxu3 %v3707_v41  ;;  %v2491_v41 = vld [vmem:[%s3946_s2 + $0x3d8] sm:$0xff] }
0x1133   :  { %2080 = vmatpush.msra.mxu3 %v3713_v26  ;;  %v2490_v26 = vld [vmem:[%s3946_s2 + $0x3d0] sm:$0xff] }
0x1135   :  { %2081 = vmatpush.msra.mxu3 %v3719_v57  ;;  %v2489_v57 = vld [vmem:[%s3946_s2 + $0x3c8] sm:$0xff] }
0x1137   :  { %2082 = vmatpush.msra.mxu3 %v3725_v15 }
0x1139   :  { %2083 = vmatpush.msra.mxu3 %v3731_v38  ;;  %v2488_v38 = vld [vmem:[%s3946_s2 + $0x3c0] sm:$0xff] }
0x113b   :  { %2084 = vmatpush.msra.mxu3 %v3737_v3  ;;  %v2487_v3 = vld [vmem:[%s3946_s2 + $0x3b8] sm:$0xff] }
0x113d   :  { %2085 = vmatpush.msra.mxu3 %v3743_v47  ;;  %v2486_v47 = vld [vmem:[%s3946_s2 + $0x3b0] sm:$0xff] }
0x113f   :  { %2086 = vmatpush.msra.mxu3 %v3749_v33  ;;  %v2485_v33 = vld [vmem:[%s3946_s2 + $0x3a8] sm:$0xff] }
0x1141   :  { %2087 = vmatpush.msra.mxu3 %v3754_v62 }
0x1143   :  { %2088 = vmatpush.msra.mxu3 %v3761_v1 }
0x1145   :  { %2089 = vmatpush.msra.mxu3 %v3766_v6  ;;  %v2484_v6 = vld [vmem:[%s3946_s2 + $0x3a0] sm:$0xff] }
0x1147   :  { %2090 = vmatpush.msra.mxu3 %v3772_v51 }
0x1149   :  { %2091 = vmatpush.msra.mxu3 %v3778_v12  ;;  %v2483_v12 = vld [vmem:[%s3946_s2 + $0x398] sm:$0xff] }
0x114b   :  { %2092 = vmatpush.msra.mxu3 %v3785_v48 }
0x114d   :  { %2093 = vmatpush.msra.mxu3 %v3791_v59 }
0x1165   :  { %v2059_v56 = vpop.f32.mrf.mxu2 }
0x1166   :  { %2094 = vmatmul.f32.vlgmr.msra.gmra.mxu3 %v2059_v56 }
0x116d   :  { %v2117_v32 = vpop.f32.mrf.mxu2 }
0x116e   :  { %v2120_v18 = vsel %vm511_vm1, %v2117_v32, -inf }
0x116f   :  { %2121 = vmax.xlane.f32.xlu0 %v2120_v18 }
0x1171   :  { %v914_v19 = vpop.f32.mrf.mxu3 }
0x1172   :  { %v917_v21 = vadd.f32 %v914_v19, %v810_v13 }
0x1174   :  { %v1026_v23 = vadd.f32 %v3514_v11, %v917_v21  ;;  %v2494_v11 = vld [vmem:[%s3946_s2 + $0x3f0] sm:$0xff] }
0x1175   :  { %2185 = vmatpush.msra.mxu2 %v2494_v11 }
0x1176   :  { %v1133_v24 = vadd.f32 %v3527_v45, %v1026_v23  ;;  %v2493_v45 = vld [vmem:[%s3946_s2 + $0x3e8] sm:$0xff] }
0x1177   :  { %2186 = vmatpush.msra.mxu2 %v2493_v45 }
0x1179   :  { %v1239_v27 = vpop.f32.mrf.mxu3 }
0x117a   :  { %v1242_v63 = vadd.f32 %v1239_v27, %v1133_v24 }
0x117c   :  { %v1349_v4 = vadd.f32 %v3591_v37, %v1242_v63  ;;  %v2492_v37 = vld [vmem:[%s3946_s2 + $0x3e0] sm:$0xff]  ;;  %s2212_s2 = sshll.u32 %s3947_s3, 4  ;;  %s2213_s2 = int_to_ptr.hbm [resolvable:$true] %s2212_s2 }
0x117d   :  { %2187 = vmatpush.msra.mxu2 %v2492_v37 }
0x117e   :  { %1350 = vst.msk [vmem:[#allocation3] sm:$0xff] %vm81_vm0, %v1349_v4 }
0x117f   :  { %2188 = vmatpush.msra.mxu2 %v2491_v41 }
0x1181   :  { %2189 = vmatpush.msra.mxu2 %v2490_v26 }
0x1183   :  { %2190 = vmatpush.msra.mxu2 %v2489_v57 }
0x1185   :  { %2191 = vmatpush.msra.mxu2 %v2488_v38 }
0x1187   :  { %2192 = vmatpush.msra.mxu2 %v2487_v3 }
0x1189   :  { %2193 = vmatpush.msra.mxu2 %v2486_v47 }
0x118b   :  { %2194 = vmatpush.msra.mxu2 %v2485_v33 }
0x118d   :  { %2195 = vmatpush.msra.mxu2 %v2484_v6 }
0x118f   :  { %2196 = vmatpush.msra.mxu2 %v2483_v12 }
0x1191   :  { %2197 = vmatpush.msra.mxu2 %v2482_v52  ;;  %v1540_v25 = vpop.f32.mrf.mxu3 }
0x1192   :  { %v1561_v50 = vadd.f32 %v3550_v9, %v1540_v25 }
0x1193   :  { %2198 = vmatpush.msra.mxu2 %v2481_v22 }
0x1194   :  { %v1670_v43 = vadd.f32 %v3593_v39, %v1561_v50 }
0x1195   :  { %2199 = vmatpush.msra.mxu2 %v2480_v31 }
0x11b1   :  { %v1773_v30 = vpop.f32.mrf.mxu3 }
0x11b2   :  { %v1776_v53 = vadd.f32 %v1773_v30, %v1670_v43 }
0x11b4   :  { %v1884_v49 = vadd.f32 %v1881_v20, %v1776_v53 }
0x11b6   :  { %v1990_v42 = vadd.f32 %v1987_v60, %v1884_v49 }
0x11e2   :  { %v2122_v34 = vpop.xlane.xlu0 %2121 }
0x11e3   :  { %v2123_v54 = vsub.f32 %v2117_v32, %v2122_v34 }
0x11e5   :  { %v2124_v36 = vmul.f32 1.442695, %v2123_v54 }
0x11e7   :  { %2563 = vpow2.f32 %v2124_v36 }
0x11e9   :  { %v2095_v61 = vpop.f32.mrf.mxu3 }
0x11ea   :  { %v2098_v16 = vadd.f32 %v2095_v61, %v1990_v42 }
0x11ed   :  { %v2564_v8 = vpop.eup %2563 }
0x11ee   :  { %v2126_v58 = vsel %vm511_vm1, %v2564_v8, 0.0 }
0x11ef   :  { %2127 = vadd.xlane.f32.xlu1 %v2126_v58 }
0x1262   :  { %v2128_v15 = vpop.xlane.xlu1 %2127 }
0x1263   :  { %2565 = vrcp.f32 %v2128_v15  ;;  %v2140_v48 = vand.u32 2147483648, %v2128_v15  ;;  %v2138_v44 = vand.u32 2147483647, %v2128_v15  ;;  %vm2134_vm7 = vweird.f32 %v2128_v15 }
0x1265   :  { %v2141_v29 = vor.u32 1.1754944e-38, %v2140_v48  ;;  %vm2139_vm9 = vcmp.eq.f32.partialorder %v2138_v44, 8.507059e+37 }
0x1269   :  { %v2566_v62 = vpop.eup %2565 }
0x126a   :  { %v2130_v1 = vmul.f32 %v2566_v62, %v2128_v15  ;;  %vm2135_vm6 = vweird.f32 %v2566_v62 }
0x126b   :  { %vm2136_vm8 = vmor %vm2134_vm7, %vm2135_vm6 }
0x126c   :  { %v2131_v51 = vsub.f32 1.0, %v2130_v1 }
0x126e   :  { %v2132_v59 = vmul.f32 %v2566_v62, %v2131_v51 }
0x1270   :  { %v2133_v17 = vadd.f32 %v2566_v62, %v2132_v59 }
0x1272   :  { %v2137_v0 = vsel %vm2136_vm8, %v2566_v62, %v2133_v17 }
0x1273   :  { %v2142_v5 = vsel %vm2139_vm9, %v2141_v29, %v2137_v0 }
0x1274   :  { %v2144_v2 = vmul.f32 %v2564_v8, %v2142_v5 }
0x1276   :  { %2479 = vmatmul.msk.f32.vlgmr.msrb.gmra.mxu0 %vm511_vm1, %v2144_v2 }
0x12f3   :  { %v2165_v14 = vpop.f32.mrf.mxu0 }
0x12f4   :  { %2200 = vmatmul.f32.vlgmr.msra.gmra.mxu2 %v2165_v14 }
0x1377   :  { %v2201_v10 = vpop.f32.mrf.mxu2 }
0x1378   :  { %v2204_v40 = vadd.f32 %v2201_v10, %v2098_v16 }
0x137a   :  { %2205 = vst.msk [vmem:[#allocation3 + $0x8] sm:$0xff] %vm81_vm0, %v2204_v40 }
0x137b   :  { %2218 = dma.vmem_to_hbm [thread:$0]  %s2211_s10, 256, %s2213_s2, [#allocation4], %s2595_s13, %s2595_s13, %s2596_s14  }
0x137c   :  { %2592 = dma.done.wait [#allocation4], 256  }
0x137d   :  { %2593 = vsyncadd [#allocation4], 4294967040 }
0x137e   :  { %2223 = vsyncpa [#allocation4], 1 }

</bundles_post_ra>
